<compile_context>
chip_gen: v6e
topology: v6e:2x2x1
jax: 0.10.0
libtpu: 0.0.40
codegen_flags: <defaults>
</compile_context>

<pallas_src>
import jax
import jax.numpy as jnp
from jax.experimental import pallas as pl
from jax.experimental.pallas import tpu as pltpu

IN_DIM = 2
OUT_DIM = 2
H_DIM = 400           # logical hidden width (PyTorch h_dim)
H_PAD = 512           # padded hidden width: 4*128 lanes = 2*256 MXU tiles
OUT_PAD = 128         # lane-dense padded N for the last MXU matmul
OUT_STORE = 8         # narrow HBM writeback width (real columns are 0..1)


def _round_up(x, m):
    return ((x + m - 1) // m) * m


def _generator_kernel(x_ref,
                      w1_ref, b1_ref,
                      w2_ref, b2_ref,
                      w3_ref, b3_ref,
                      w4_ref, b4_ref,
                      o_ref):
    x = x_ref[...]                                       # (TB, 2) f32

    # Layer 1 (K=2): two VPU rank-1 updates instead of a degenerate MXU matmul.
    w1 = w1_ref[...]                                     # (2, H_PAD) f32
    h = x[:, 0:1] * w1[0:1, :] + x[:, 1:2] * w1[1:2, :] + b1_ref[...]
    h = jnp.maximum(h, 0.0)

    # Layers 2/3: bf16 MXU matmuls, f32 accumulation, f32 bias + ReLU.
    h = jnp.dot(h.astype(jnp.bfloat16), w2_ref[...],
                preferred_element_type=jnp.float32) + b2_ref[...]
    h = jnp.maximum(h, 0.0)

    h = jnp.dot(h.astype(jnp.bfloat16), w3_ref[...],
                preferred_element_type=jnp.float32) + b3_ref[...]
    h = jnp.maximum(h, 0.0)

    # Layer 4: lane-dense (TB, 128) MXU tile; store only the narrow 8-lane slab
    # (real outputs live in columns 0..1) to cut HBM writeback 16x.
    out = jnp.dot(h.astype(jnp.bfloat16), w4_ref[...],
                  preferred_element_type=jnp.float32) + b4_ref[...]
    o_ref[...] = out[:, :OUT_STORE]


def _choose_tiling(B, block_b):
    """Balanced batch tiles: minimal zero-row padding, tb a multiple of 16,
    and >=2 (even) grid steps for large batches so both v7x TCs engage."""
    n = max(1, pl.cdiv(B, block_b))
    if B >= 256:                 # enough rows that a 2-way TC split pays off
        n = max(n, 2)
    if n > 1 and n % 2 == 1:
        n += 1                   # even grid -> balanced megacore split
    tb = _round_up(pl.cdiv(B, n), 16)   # >=16 sublanes: native bf16 tile
    return tb, n * tb, n


def generator_forward(z, params, *, block_b=1024):
    """z: (B, 2) float32.  params: padded kernel params (prepare_kernel_params).
    Returns (B, 2) float32 — matches the PyTorch Generator forward."""
    B = z.shape[0]
    tb, b_pad, n = _choose_tiling(B, block_b)
    if b_pad != B:
        z = jnp.pad(z, ((0, b_pad - B), (0, 0)))

    resident = pl.BlockSpec(memory_space=pltpu.MemorySpace.VMEM)  # weights stay put

    out = pl.pallas_call(
        _generator_kernel,
        out_shape=jax.ShapeDtypeStruct((b_pad, OUT_STORE), jnp.float32),
        grid=(n,),
        in_specs=[pl.BlockSpec((tb, IN_DIM), lambda i: (i, 0))] + [resident] * 8,
        out_specs=pl.BlockSpec((tb, OUT_STORE), lambda i: (i, 0)),
        compiler_params=pltpu.CompilerParams(
            dimension_semantics=("parallel",),        # shard batch across TCs (v7x)
            vmem_limit_bytes=32 * 1024 * 1024,        # fits tb=1024 with headroom
        ),
    )(z,
      params["w1"], params["b1"],
      params["w2"], params["b2"],
      params["w3"], params["b3"],
      params["w4"], params["b4"])
    return out[:B, :OUT_DIM]


def init_params(key):
    """Deterministic synthetic parameters (PyTorch Linear default init),
    logical shapes, f32."""
    ks = jax.random.split(key, 8)

    def lin(kw, kb, fan_in, fan_out):
        s = 1.0 / jnp.sqrt(jnp.float32(fan_in))
        w = jax.random.uniform(kw, (fan_in, fan_out), jnp.float32, -s, s)
        b = jax.random.uniform(kb, (fan_out,), jnp.float32, -s, s)
        return w, b

    w1, b1 = lin(ks[0], ks[1], IN_DIM, H_DIM)
    w2, b2 = lin(ks[2], ks[3], H_DIM, H_DIM)
    w3, b3 = lin(ks[4], ks[5], H_DIM, H_DIM)
    w4, b4 = lin(ks[6], ks[7], H_DIM, OUT_DIM)
    return dict(w1=w1, b1=b1, w2=w2, b2=b2, w3=w3, b3=b3, w4=w4, b4=b4)


def prepare_kernel_params(p):
    """Zero-pad hidden 400->512 and output 2->128; cast the big weights to bf16.
    Padding is exact: padded bias lanes and padded weight rows/cols are zero,
    so padded hidden units stay at 0 through ReLU and contribute nothing."""
    def pad(a, shape):
        return jnp.zeros(shape, a.dtype).at[:a.shape[0], :a.shape[1]].set(a)

    w1 = pad(p["w1"], (IN_DIM, H_PAD))                        # small: keep f32
    b1 = pad(p["b1"][None, :], (1, H_PAD))
    w2 = pad(p["w2"], (H_PAD, H_PAD)).astype(jnp.bfloat16)
    b2 = pad(p["b2"][None, :], (1, H_PAD))
    w3 = pad(p["w3"], (H_PAD, H_PAD)).astype(jnp.bfloat16)
    b3 = pad(p["b3"][None, :], (1, H_PAD))
    w4 = pad(p["w4"], (H_PAD, OUT_PAD)).astype(jnp.bfloat16)
    b4 = pad(p["b4"][None, :], (1, OUT_PAD))
    return dict(w1=w1, b1=b1, w2=w2, b2=b2, w3=w3, b3=b3, w4=w4, b4=b4)


def reference_forward_bf16(z, kp):
    """Pure-JAX reference mirroring the kernel math (bf16 MXU inputs, f32 acc)."""
    h = z[:, 0:1] * kp["w1"][0:1, :] + z[:, 1:2] * kp["w1"][1:2, :] + kp["b1"]
    h = jnp.maximum(h, 0.0)
    h = jnp.dot(h.astype(jnp.bfloat16), kp["w2"],
                preferred_element_type=jnp.float32) + kp["b2"]
    h = jnp.maximum(h, 0.0)
    h = jnp.dot(h.astype(jnp.bfloat16), kp["w3"],
                preferred_element_type=jnp.float32) + kp["b3"]
    h = jnp.maximum(h, 0.0)
    out = jnp.dot(h.astype(jnp.bfloat16), kp["w4"],
                  preferred_element_type=jnp.float32) + kp["b4"]
    return out[:, :OUT_DIM]


def reference_forward_f32(z, p):
    """Full-precision reference on the original (unpadded) params."""
    h = jnp.maximum(z @ p["w1"] + p["b1"], 0.0)
    h = jnp.maximum(h @ p["w2"] + p["b2"], 0.0)
    h = jnp.maximum(h @ p["w3"] + p["b3"], 0.0)
    return h @ p["w4"] + p["b4"]


if __name__ == "__main__":
    key = jax.random.PRNGKey(0)
    k_param, k_z1, k_z2 = jax.random.split(key, 3)

    params = init_params(k_param)
    kparams = prepare_kernel_params(params)

    # Small demo batch (single grid step).
    z_small = jax.random.normal(k_z1, (8, IN_DIM), jnp.float32)
    out_small = jax.block_until_ready(generator_forward(z_small, kparams))

    assert out_small.shape == (8, OUT_DIM), out_small.shape
    assert jnp.allclose(out_small, reference_forward_bf16(z_small, kparams),
                        atol=1e-3, rtol=1e-3)
    assert jnp.allclose(out_small, reference_forward_f32(z_small, params),
                        atol=3e-2, rtol=3e-2)

    # Larger batch: exercises the balanced-tile path (grid of 2 "parallel" steps).
    z_big = jax.random.normal(k_z2, (300, IN_DIM), jnp.float32)
    out_big = jax.block_until_ready(generator_forward(z_big, kparams))

    assert out_big.shape == (300, OUT_DIM), out_big.shape
    assert jnp.allclose(out_big, reference_forward_bf16(z_big, kparams),
                        atol=1e-3, rtol=1e-3)
    assert jnp.allclose(out_big, reference_forward_f32(z_big, params),
                        atol=3e-2, rtol=3e-2)

    print("KERNEL_OK")
</pallas_src>

<mosaic_0001>
module attributes {stable_mosaic.version = 11 : i64} {
  func.func @_generator_kernel(%arg0: i32, %arg1: memref<16x2xf32, #tpu.memory_space<vmem>>, %arg2: memref<2x512xf32, #tpu.memory_space<vmem>>, %arg3: memref<1x512xf32, #tpu.memory_space<vmem>>, %arg4: memref<512x512xbf16, #tpu.memory_space<vmem>>, %arg5: memref<1x512xf32, #tpu.memory_space<vmem>>, %arg6: memref<512x512xbf16, #tpu.memory_space<vmem>>, %arg7: memref<1x512xf32, #tpu.memory_space<vmem>>, %arg8: memref<512x128xbf16, #tpu.memory_space<vmem>>, %arg9: memref<1x128xf32, #tpu.memory_space<vmem>>, %arg10: memref<16x8xf32, #tpu.memory_space<vmem>>) attributes {dimension_semantics = [#tpu.dimension_semantics<parallel>], iteration_bounds = array<i64: 1>, scalar_prefetch = 0 : i64, scratch_operands = 0 : i64, tpu.core_type = #tpu.core_type<tc>, window_params = [{transform_indices = @transform_0, window_bounds = array<i64: 16, 2>}, {pipeline_mode = #tpu.pipeline_mode<synchronous>, transform_indices = @transform_1, window_bounds = array<i64: 2, 512>}, {pipeline_mode = #tpu.pipeline_mode<synchronous>, transform_indices = @transform_2, window_bounds = array<i64: 1, 512>}, {pipeline_mode = #tpu.pipeline_mode<synchronous>, transform_indices = @transform_3, window_bounds = array<i64: 512, 512>}, {pipeline_mode = #tpu.pipeline_mode<synchronous>, transform_indices = @transform_4, window_bounds = array<i64: 1, 512>}, {pipeline_mode = #tpu.pipeline_mode<synchronous>, transform_indices = @transform_5, window_bounds = array<i64: 512, 512>}, {pipeline_mode = #tpu.pipeline_mode<synchronous>, transform_indices = @transform_6, window_bounds = array<i64: 1, 512>}, {pipeline_mode = #tpu.pipeline_mode<synchronous>, transform_indices = @transform_7, window_bounds = array<i64: 512, 128>}, {pipeline_mode = #tpu.pipeline_mode<synchronous>, transform_indices = @transform_8, window_bounds = array<i64: 1, 128>}, {transform_indices = @transform_9, window_bounds = array<i64: 16, 8>}]} {
    %c0 = arith.constant 0 : index
    %c0_0 = arith.constant 0 : index
    %0 = vector.load %arg1[%c0, %c0_0] : memref<16x2xf32, #tpu.memory_space<vmem>>, vector<16x2xf32>
    %c0_1 = arith.constant 0 : index
    %c0_2 = arith.constant 0 : index
    %1 = vector.load %arg2[%c0_1, %c0_2] : memref<2x512xf32, #tpu.memory_space<vmem>>, vector<2x512xf32>
    %2 = vector.extract_strided_slice %0 {offsets = [0, 0], sizes = [16, 1], strides = [1, 1]} : vector<16x2xf32> to vector<16x1xf32>
    %3 = vector.extract_strided_slice %1 {offsets = [0, 0], sizes = [1, 512], strides = [1, 1]} : vector<2x512xf32> to vector<1x512xf32>
    %4 = vector.broadcast %2 : vector<16x1xf32> to vector<16x512xf32>
    %5 = vector.broadcast %3 : vector<1x512xf32> to vector<16x512xf32>
    %6 = arith.mulf %4, %5 : vector<16x512xf32>
    %7 = vector.extract_strided_slice %0 {offsets = [0, 1], sizes = [16, 1], strides = [1, 1]} : vector<16x2xf32> to vector<16x1xf32>
    %8 = vector.extract_strided_slice %1 {offsets = [1, 0], sizes = [1, 512], strides = [1, 1]} : vector<2x512xf32> to vector<1x512xf32>
    %9 = vector.broadcast %7 : vector<16x1xf32> to vector<16x512xf32>
    %10 = vector.broadcast %8 : vector<1x512xf32> to vector<16x512xf32>
    %11 = arith.mulf %9, %10 : vector<16x512xf32>
    %12 = arith.addf %6, %11 : vector<16x512xf32>
    %c0_3 = arith.constant 0 : index
    %c0_4 = arith.constant 0 : index
    %13 = vector.load %arg3[%c0_3, %c0_4] : memref<1x512xf32, #tpu.memory_space<vmem>>, vector<1x512xf32>
    %14 = vector.broadcast %13 : vector<1x512xf32> to vector<16x512xf32>
    %15 = arith.addf %12, %14 : vector<16x512xf32>
    %cst = arith.constant 0.000000e+00 : f32
    %16 = vector.broadcast %cst : f32 to vector<16x512xf32>
    %17 = arith.maximumf %15, %16 : vector<16x512xf32>
    %18 = arith.truncf %17 : vector<16x512xf32> to vector<16x512xbf16>
    %c0_5 = arith.constant 0 : index
    %c0_6 = arith.constant 0 : index
    %19 = vector.load %arg4[%c0_5, %c0_6] : memref<512x512xbf16, #tpu.memory_space<vmem>>, vector<512x512xbf16>
    %cst_7 = arith.constant dense<0.000000e+00> : vector<16x512xf32>
    %20 = tpu.matmul %18, %19, %cst_7 {dimension_numbers = #tpu.dot_dimension_numbers<[1], [0], [0], [1], [0, 0, 1, 1], [], []>} : vector<16x512xbf16>, vector<512x512xbf16>, vector<16x512xf32> -> vector<16x512xf32>
    %c0_8 = arith.constant 0 : index
    %c0_9 = arith.constant 0 : index
    %21 = vector.load %arg5[%c0_8, %c0_9] : memref<1x512xf32, #tpu.memory_space<vmem>>, vector<1x512xf32>
    %22 = vector.broadcast %21 : vector<1x512xf32> to vector<16x512xf32>
    %23 = arith.addf %20, %22 : vector<16x512xf32>
    %cst_10 = arith.constant 0.000000e+00 : f32
    %24 = vector.broadcast %cst_10 : f32 to vector<16x512xf32>
    %25 = arith.maximumf %23, %24 : vector<16x512xf32>
    %26 = arith.truncf %25 : vector<16x512xf32> to vector<16x512xbf16>
    %c0_11 = arith.constant 0 : index
    %c0_12 = arith.constant 0 : index
    %27 = vector.load %arg6[%c0_11, %c0_12] : memref<512x512xbf16, #tpu.memory_space<vmem>>, vector<512x512xbf16>
    %cst_13 = arith.constant dense<0.000000e+00> : vector<16x512xf32>
    %28 = tpu.matmul %26, %27, %cst_13 {dimension_numbers = #tpu.dot_dimension_numbers<[1], [0], [0], [1], [0, 0, 1, 1], [], []>} : vector<16x512xbf16>, vector<512x512xbf16>, vector<16x512xf32> -> vector<16x512xf32>
    %c0_14 = arith.constant 0 : index
    %c0_15 = arith.constant 0 : index
    %29 = vector.load %arg7[%c0_14, %c0_15] : memref<1x512xf32, #tpu.memory_space<vmem>>, vector<1x512xf32>
    %30 = vector.broadcast %29 : vector<1x512xf32> to vector<16x512xf32>
    %31 = arith.addf %28, %30 : vector<16x512xf32>
    %cst_16 = arith.constant 0.000000e+00 : f32
    %32 = vector.broadcast %cst_16 : f32 to vector<16x512xf32>
    %33 = arith.maximumf %31, %32 : vector<16x512xf32>
    %34 = arith.truncf %33 : vector<16x512xf32> to vector<16x512xbf16>
    %c0_17 = arith.constant 0 : index
    %c0_18 = arith.constant 0 : index
    %35 = vector.load %arg8[%c0_17, %c0_18] : memref<512x128xbf16, #tpu.memory_space<vmem>>, vector<512x128xbf16>
    %cst_19 = arith.constant dense<0.000000e+00> : vector<16x128xf32>
    %36 = tpu.matmul %34, %35, %cst_19 {dimension_numbers = #tpu.dot_dimension_numbers<[1], [0], [0], [1], [0, 0, 1, 1], [], []>} : vector<16x512xbf16>, vector<512x128xbf16>, vector<16x128xf32> -> vector<16x128xf32>
    %c0_20 = arith.constant 0 : index
    %c0_21 = arith.constant 0 : index
    %37 = vector.load %arg9[%c0_20, %c0_21] : memref<1x128xf32, #tpu.memory_space<vmem>>, vector<1x128xf32>
    %38 = vector.broadcast %37 : vector<1x128xf32> to vector<16x128xf32>
    %39 = arith.addf %36, %38 : vector<16x128xf32>
    %40 = vector.extract_strided_slice %39 {offsets = [0, 0], sizes = [16, 8], strides = [1, 1]} : vector<16x128xf32> to vector<16x8xf32>
    %c0_22 = arith.constant 0 : index
    %c0_23 = arith.constant 0 : index
    %41 = vector.load %arg10[%c0_22, %c0_23] : memref<16x8xf32, #tpu.memory_space<vmem>>, vector<16x8xf32>
    tpu.vector_store %arg10[%c0_22, %c0_23], %40 {strides = array<i32>} : memref<16x8xf32, #tpu.memory_space<vmem>>, vector<16x8xf32>,
    return
  }
  func.func @transform_0(%arg0: i32) -> (i32, i32) {
    %c0_i32 = arith.constant 0 : i32
    %c0_i32_0 = arith.constant 0 : i32
    return %arg0, %c0_i32 : i32, i32
  }
  func.func @transform_1(%arg0: i32) -> (i32, i32) {
    %c0_i32 = arith.constant 0 : i32
    %c0_i32_0 = arith.constant 0 : i32
    %c0_i32_1 = arith.constant 0 : i32
    return %c0_i32, %c0_i32_0 : i32, i32
  }
  func.func @transform_2(%arg0: i32) -> (i32, i32) {
    %c0_i32 = arith.constant 0 : i32
    %c0_i32_0 = arith.constant 0 : i32
    %c0_i32_1 = arith.constant 0 : i32
    return %c0_i32, %c0_i32_0 : i32, i32
  }
  func.func @transform_3(%arg0: i32) -> (i32, i32) {
    %c0_i32 = arith.constant 0 : i32
    %c0_i32_0 = arith.constant 0 : i32
    %c0_i32_1 = arith.constant 0 : i32
    return %c0_i32, %c0_i32_0 : i32, i32
  }
  func.func @transform_4(%arg0: i32) -> (i32, i32) {
    %c0_i32 = arith.constant 0 : i32
    %c0_i32_0 = arith.constant 0 : i32
    %c0_i32_1 = arith.constant 0 : i32
    return %c0_i32, %c0_i32_0 : i32, i32
  }
  func.func @transform_5(%arg0: i32) -> (i32, i32) {
    %c0_i32 = arith.constant 0 : i32
    %c0_i32_0 = arith.constant 0 : i32
    %c0_i32_1 = arith.constant 0 : i32
    return %c0_i32, %c0_i32_0 : i32, i32
  }
  func.func @transform_6(%arg0: i32) -> (i32, i32) {
    %c0_i32 = arith.constant 0 : i32
    %c0_i32_0 = arith.constant 0 : i32
    %c0_i32_1 = arith.constant 0 : i32
    return %c0_i32, %c0_i32_0 : i32, i32
  }
  func.func @transform_7(%arg0: i32) -> (i32, i32) {
    %c0_i32 = arith.constant 0 : i32
    %c0_i32_0 = arith.constant 0 : i32
    %c0_i32_1 = arith.constant 0 : i32
    return %c0_i32, %c0_i32_0 : i32, i32
  }
  func.func @transform_8(%arg0: i32) -> (i32, i32) {
    %c0_i32 = arith.constant 0 : i32
    %c0_i32_0 = arith.constant 0 : i32
    %c0_i32_1 = arith.constant 0 : i32
    return %c0_i32, %c0_i32_0 : i32, i32
  }
  func.func @transform_9(%arg0: i32) -> (i32, i32) {
    %c0_i32 = arith.constant 0 : i32
    %c0_i32_0 = arith.constant 0 : i32
    return %arg0, %c0_i32 : i32, i32
  }
}

</mosaic_0001>

<bundles_post_ra>
// kernel: tpu_custom_call.1
= control target key start
LH: loop header
LB: loop body
LE: loop exit
PB: predicated region body
PF: predicated region fallthrough
CT: control target
= control target key end

     0   :  { %14 = vsyncpa [#allocation3], 0  ;;  %s3510_s0 = inlined_call_operand.vmem [shape: f32[16,2], index: 0, kind: input, shape index: {}]   ;;  %s3511_s1 = inlined_call_operand.vmem [shape: f32[2,512], index: 1, kind: input, shape index: {}]   ;;  %s3512_s2 = inlined_call_operand.vmem [shape: f32[1,512], index: 2, kind: input, shape index: {}]   ;;  %s3513_s3 = inlined_call_operand.hbm [shape: bf16[512,512], index: 3, kind: input, shape index: {}]   ;;  %s3514_s4 = inlined_call_operand.vmem [shape: f32[1,512], index: 4, kind: input, shape index: {}]   ;;  %s3515_s5 = inlined_call_operand.hbm [shape: bf16[512,512], index: 5, kind: input, shape index: {}]   ;;  %s3516_s6 = inlined_call_operand.vmem [shape: f32[1,512], index: 6, kind: input, shape index: {}]   ;;  %s3517_s7 = inlined_call_operand.hbm [shape: bf16[512,128], index: 7, kind: input, shape index: {}]   ;;  %s3518_s8 = inlined_call_operand.vmem [shape: f32[1,128], index: 8, kind: input, shape index: {}]   ;;  %s3519_s9 = inlined_call_operand.vmem [shape: f32[16,8], index: 9, kind: output, shape index: {}]  }
   0x1   :  { %15 = vsyncpa [#allocation5], 0  ;;  %s3361_s30 = smov [#allocation4]   ;;  %s3362_s11 = smov [#allocation2]  }
   0x2   :  { %s41_s10 = sshll.u32 %s3361_s30, 4  ;;  %s27_s12 = sshll.u32 %s3362_s11, 4  ;;  %s42_s10 = int_to_ptr.vmem [resolvable:$true] %s41_s10  ;;  %s28_s12 = int_to_ptr.vmem [resolvable:$true] %s27_s12 }
   0x3   :  { %s3305_s13 = scalar_lea.vmem %s42_s10, 16384  ;;  %p3310_p1 = scmp.lt.s32.totalorder %s42_s10, %s42_s10 }
   0x4   :  { %p3306_p0 = scmp.ne.s32.totalorder %s42_s10, %s3305_s13  ;;  %p3311_p2 = scmp.lt.s32.totalorder %s3305_s13, %s3305_s13 }
   0x6   :  { %p3312_p3 = por %p3311_p2, %p3310_p1 }
   0x8   :  { %p3313_p4 = pnand %p3312_p3, %p3306_p0 }
   0xa   :  { %3316 = shalt.err (!%p3313_p4)
}
   0xb   :  { %s3363_s14 = smov 256   ;;  %s3364_s15 = smov 16  }
   0xc   :  { %47 = dma.hbm_to_vmem [thread:$0]  %s3515_s5, 16384, %s42_s10, [#allocation5], %s3363_s14, %s3363_s14, %s3364_s15  }
   0xd   :  { %s3325_s18 = scalar_lea.vmem %s28_s12, 16384  ;;  %p3330_p6 = scmp.lt.s32.totalorder %s28_s12, %s28_s12 }
   0xe   :  { %p3326_p5 = scmp.ne.s32.totalorder %s28_s12, %s3325_s18  ;;  %p3331_p7 = scmp.lt.s32.totalorder %s3325_s18, %s3325_s18 }
  0x10   :  { %p3332_p8 = por %p3331_p7, %p3330_p6 }
  0x12   :  { %p3333_p9 = pnand %p3332_p8, %p3326_p5 }
  0x14   :  { %3336 = shalt.err (!%p3333_p9)
}
  0x15   :  { %33 = dma.hbm_to_vmem [thread:$0]  %s3513_s3, 16384, %s28_s12, [#allocation3], %s3363_s14, %s3363_s14, %s3364_s15  }
  0x16   :  { %s3365_s21 = smov [#allocation6]  }
  0x17   :  { %s55_s22 = sshll.u32 %s3365_s21, 4  ;;  %s56_s22 = int_to_ptr.vmem [resolvable:$true] %s55_s22 }
  0x18   :  { %s3345_s23 = scalar_lea.vmem %s56_s22, 4096  ;;  %p3350_p11 = scmp.lt.s32.totalorder %s56_s22, %s56_s22 }
  0x19   :  { %p3346_p10 = scmp.ne.s32.totalorder %s56_s22, %s3345_s23  ;;  %p3351_p12 = scmp.lt.s32.totalorder %s3345_s23, %s3345_s23 }
  0x1b   :  { %p3352_p13 = por %p3351_p12, %p3350_p11 }
  0x1d   :  { %p3353_p0 = pnand %p3352_p13, %p3346_p10 }
  0x1f   :  { %3356 = shalt.err (!%p3353_p0)
}
  0x20   :  { %s3366_s5 = smov 64   ;;  %s3367_s24 = smov 4  }
  0x21   :  { %61 = dma.hbm_to_vmem [thread:$0]  %s3517_s7, 4096, %s56_s22, [#allocation5], %s3366_s5, %s3366_s5, %s3367_s24  }
  0x22   :  { %3357 = dma.done.wait [#allocation3], 16384  }
  0x23   :  { %3358 = vsyncadd [#allocation3], 4294950912 }
  0x24   :  { %3359 = dma.done.wait [#allocation5], 20480  }
  0x25   :  { %3360 = vsyncadd [#allocation5], 4294946816  ;;  %v3368_v0 = vmov 1   ;;  %v3369_v1 = vmov 0   ;;  %v74_v2 = vld [vmem:[%s3510_s0] sm:$0xff]  ;;  %v75_v3 = vld [vmem:[%s3510_s0 + $0x8] sm:$0xff] }
  0x26   :  { %2879 = vset.pattern.permute.xlu1 %v3368_v0  ;;  %2878 = vset.pattern.permute.xlu0 %v3369_v1  ;;  %v2881_v4 = vld [vmem:[#allocation2 + $0xe4] ss:$16 sps:$4 sm:$0xff]   ;;  %v2885_v6 = vld [vmem:[#allocation2 + $0xe0] ss:$16 sps:$4 sm:$0xff]   ;;  %vm2527_vm0 = vcmask 64512  }
  0x27   :  { %133 = vperm.xlu1 %2879, %v74_v2   ;;  %79 = vperm.xlu0 %2878, %v74_v2   ;;  %v2883_v5 = vld [vmem:[#allocation2 + $0x2e4] ss:$16 sps:$4 sm:$0xff]   ;;  %v2886_v7 = vld [vmem:[#allocation2 + $0x2e0] ss:$16 sps:$4 sm:$0xff]  }
  0x28   :  { %1024 = vmatprep.subr.bf16.mxu0 %v2881_v4  ;;  %1067 = vmatprep.subr.bf16.mxu1 %v2883_v5  ;;  %v2887_v8 = vld [vmem:[#allocation2 + $0xc4] ss:$16 sps:$4 sm:$0xff]   ;;  %v2891_v10 = vld [vmem:[#allocation2 + $0xc0] ss:$16 sps:$4 sm:$0xff]   ;;  %v2982_v5 = vld [vmem:[#allocation2 + $0x2ec] ss:$16 sps:$4 sm:$0xff]  }
  0x29   :  { %1025 = vmatpush1.bf16.msra.mxu0 %v2885_v6  ;;  %v2889_v9 = vld [vmem:[#allocation2 + $0x2c4] ss:$16 sps:$4 sm:$0xff]   ;;  %v2892_v11 = vld [vmem:[#allocation2 + $0x2c0] ss:$16 sps:$4 sm:$0xff]   ;;  %1068 = vmatpush1.bf16.msra.mxu1 %v2886_v7  ;;  %v88_v6 = vlaneseq }
  0x2a   :  { %1026 = vmatprep.subr.bf16.mxu0 %v2887_v8  ;;  %v2893_v12 = vld [vmem:[#allocation2 + $0xa4] ss:$16 sps:$4 sm:$0xff]   ;;  %1069 = vmatprep.subr.bf16.mxu1 %v2889_v9  ;;  %v2897_v14 = vld [vmem:[#allocation2 + $0xa0] ss:$16 sps:$4 sm:$0xff]  }
  0x2b   :  { %137 = vperm.xlu1 %2879, %v75_v3   ;;  %84 = vperm.xlu0 %2878, %v75_v3   ;;  %v2895_v13 = vld [vmem:[#allocation2 + $0x2a4] ss:$16 sps:$4 sm:$0xff]   ;;  %v2898_v16 = vld [vmem:[#allocation2 + $0x2a0] ss:$16 sps:$4 sm:$0xff]   ;;  %v2979_v3 = vld [vmem:[#allocation2 + $0xec] ss:$16 sps:$4 sm:$0xff]  }
  0x2c   :  { %v2899_v15 = vld [vmem:[#allocation2 + $0x84] ss:$16 sps:$4 sm:$0xff]   ;;  %v2903_v18 = vld [vmem:[#allocation2 + $0x80] ss:$16 sps:$4 sm:$0xff]   ;;  %v89_v7 = vshrl.u32 %v88_v6, 7 }
  0x2d   :  { %1027 = vmatpush1.bf16.msra.mxu0 %v2891_v10  ;;  %1070 = vmatpush1.bf16.msra.mxu1 %v2892_v11  ;;  %v2901_v17 = vld [vmem:[#allocation2 + $0x284] ss:$16 sps:$4 sm:$0xff]   ;;  %v2904_v20 = vld [vmem:[#allocation2 + $0x280] ss:$16 sps:$4 sm:$0xff]  }
  0x2e   :  { %1028 = vmatprep.subr.bf16.mxu0 %v2893_v12  ;;  %1071 = vmatprep.subr.bf16.mxu1 %v2895_v13  ;;  %v2905_v19 = vld [vmem:[#allocation2 + $0x64] ss:$16 sps:$4 sm:$0xff]   ;;  %v2909_v22 = vld [vmem:[#allocation2 + $0x60] ss:$16 sps:$4 sm:$0xff]   ;;  %v3435_v8 = vsub.s32 1, %v89_v7  ;;  %v3437_v9 = vsub.s32 3, %v89_v7 }
  0x2f   :  { %2880 = vset.pattern.permute.xlu0 %v3368_v0  ;;  %v2907_v21 = vld [vmem:[#allocation2 + $0x264] ss:$16 sps:$4 sm:$0xff]   ;;  %v2910_v24 = vld [vmem:[#allocation2 + $0x260] ss:$16 sps:$4 sm:$0xff]   ;;  %v150_v10 = vsub.s32 5, %v89_v7  ;;  %v154_v11 = vsub.s32 7, %v89_v7 }
  0x30   :  { %v2911_v23 = vld [vmem:[#allocation2 + $0x44] ss:$16 sps:$4 sm:$0xff]   ;;  %v2915_v26 = vld [vmem:[#allocation2 + $0x40] ss:$16 sps:$4 sm:$0xff]   ;;  %v3442_v13 = vsub.s32 0, %v89_v7 }
  0x31   :  { %1029 = vmatpush1.bf16.msra.mxu0 %v2897_v14  ;;  %1072 = vmatpush1.bf16.msra.mxu1 %v2898_v16  ;;  %v2913_v25 = vld [vmem:[#allocation2 + $0x244] ss:$16 sps:$4 sm:$0xff]   ;;  %v2916_v28 = vld [vmem:[#allocation2 + $0x240] ss:$16 sps:$4 sm:$0xff]   ;;  %v3444_v14 = vsub.s32 2, %v89_v7  ;;  %v102_v16 = vsub.s32 6, %v89_v7 }
  0x32   :  { %1030 = vmatprep.subr.bf16.mxu0 %v2899_v15  ;;  %1073 = vmatprep.subr.bf16.mxu1 %v2901_v17  ;;  %v2917_v27 = vld [vmem:[#allocation2 + $0x24] ss:$16 sps:$4 sm:$0xff]   ;;  %v2921_v30 = vld [vmem:[#allocation2 + $0x20] ss:$16 sps:$4 sm:$0xff]   ;;  %v98_v15 = vsub.s32 4, %v89_v7 }
  0x33   :  { %v2919_v29 = vld [vmem:[#allocation2 + $0x224] ss:$16 sps:$4 sm:$0xff]   ;;  %v2922_v32 = vld [vmem:[#allocation2 + $0x220] ss:$16 sps:$4 sm:$0xff]  }
  0x34   :  { %v2923_v31 = vld [vmem:[#allocation2 + $0x4] ss:$16 sps:$4 sm:$0xff]   ;;  %v2927_v34 = vld [vmem:[#allocation2] ss:$16 sps:$4 sm:$0xff]  }
  0x35   :  { %1031 = vmatpush1.bf16.msra.mxu0 %v2903_v18  ;;  %1074 = vmatpush1.bf16.msra.mxu1 %v2904_v20  ;;  %v2925_v33 = vld [vmem:[#allocation2 + $0x204] ss:$16 sps:$4 sm:$0xff]   ;;  %v2928_v36 = vld [vmem:[#allocation2 + $0x200] ss:$16 sps:$4 sm:$0xff]  }
  0x36   :  { %1032 = vmatprep.subr.bf16.mxu0 %v2905_v19  ;;  %1075 = vmatprep.subr.bf16.mxu1 %v2907_v21  ;;  %v2929_v35 = vld [vmem:[#allocation2 + $0x1e4] ss:$16 sps:$4 sm:$0xff]   ;;  %v2933_v38 = vld [vmem:[#allocation2 + $0x1e0] ss:$16 sps:$4 sm:$0xff]  }
  0x37   :  { %v2931_v37 = vld [vmem:[#allocation2 + $0x3e4] ss:$16 sps:$4 sm:$0xff]   ;;  %v2934_v40 = vld [vmem:[#allocation2 + $0x3e0] ss:$16 sps:$4 sm:$0xff]  }
  0x38   :  { %v2935_v39 = vld [vmem:[#allocation2 + $0x1c4] ss:$16 sps:$4 sm:$0xff]   ;;  %v2939_v42 = vld [vmem:[#allocation2 + $0x1c0] ss:$16 sps:$4 sm:$0xff]  }
  0x39   :  { %1033 = vmatpush1.bf16.msra.mxu0 %v2909_v22  ;;  %1076 = vmatpush1.bf16.msra.mxu1 %v2910_v24  ;;  %v2937_v41 = vld [vmem:[#allocation2 + $0x3c4] ss:$16 sps:$4 sm:$0xff]   ;;  %v2940_v44 = vld [vmem:[#allocation2 + $0x3c0] ss:$16 sps:$4 sm:$0xff]  }
  0x3a   :  { %1034 = vmatprep.subr.bf16.mxu0 %v2911_v23  ;;  %1077 = vmatprep.subr.bf16.mxu1 %v2913_v25  ;;  %v2941_v43 = vld [vmem:[#allocation2 + $0x1a4] ss:$16 sps:$4 sm:$0xff]   ;;  %v2945_v46 = vld [vmem:[#allocation2 + $0x1a0] ss:$16 sps:$4 sm:$0xff]  }
  0x3b   :  { %v2943_v45 = vld [vmem:[#allocation2 + $0x3a4] ss:$16 sps:$4 sm:$0xff]   ;;  %v2946_v48 = vld [vmem:[#allocation2 + $0x3a0] ss:$16 sps:$4 sm:$0xff]  }
  0x3c   :  { %v2947_v47 = vld [vmem:[#allocation2 + $0x184] ss:$16 sps:$4 sm:$0xff]   ;;  %v2951_v50 = vld [vmem:[#allocation2 + $0x180] ss:$16 sps:$4 sm:$0xff]  }
  0x3d   :  { %1035 = vmatpush1.bf16.msra.mxu0 %v2915_v26  ;;  %1078 = vmatpush1.bf16.msra.mxu1 %v2916_v28  ;;  %v2949_v49 = vld [vmem:[#allocation2 + $0x384] ss:$16 sps:$4 sm:$0xff]   ;;  %v2952_v52 = vld [vmem:[#allocation2 + $0x380] ss:$16 sps:$4 sm:$0xff]  }
  0x3e   :  { %1036 = vmatprep.subr.bf16.mxu0 %v2917_v27  ;;  %1079 = vmatprep.subr.bf16.mxu1 %v2919_v29  ;;  %v2953_v51 = vld [vmem:[#allocation2 + $0x164] ss:$16 sps:$4 sm:$0xff]   ;;  %v2957_v54 = vld [vmem:[#allocation2 + $0x160] ss:$16 sps:$4 sm:$0xff]  }
  0x3f   :  { %v2955_v53 = vld [vmem:[#allocation2 + $0x364] ss:$16 sps:$4 sm:$0xff]   ;;  %v2958_v56 = vld [vmem:[#allocation2 + $0x360] ss:$16 sps:$4 sm:$0xff]  }
  0x40   :  { %v2959_v55 = vld [vmem:[#allocation2 + $0x144] ss:$16 sps:$4 sm:$0xff]   ;;  %v2963_v58 = vld [vmem:[#allocation2 + $0x140] ss:$16 sps:$4 sm:$0xff]  }
  0x41   :  { %1037 = vmatpush1.bf16.msra.mxu0 %v2921_v30  ;;  %1080 = vmatpush1.bf16.msra.mxu1 %v2922_v32  ;;  %v2961_v57 = vld [vmem:[#allocation2 + $0x344] ss:$16 sps:$4 sm:$0xff]   ;;  %v2964_v60 = vld [vmem:[#allocation2 + $0x340] ss:$16 sps:$4 sm:$0xff]  }
  0x42   :  { %1038 = vmatprep.subr.bf16.mxu0 %v2923_v31  ;;  %1081 = vmatprep.subr.bf16.mxu1 %v2925_v33  ;;  %v2965_v59 = vld [vmem:[#allocation2 + $0x124] ss:$16 sps:$4 sm:$0xff]   ;;  %v2969_v62 = vld [vmem:[#allocation2 + $0x120] ss:$16 sps:$4 sm:$0xff]  }
  0x43   :  { %v2967_v61 = vld [vmem:[#allocation2 + $0x324] ss:$16 sps:$4 sm:$0xff]   ;;  %v2970_v0 = vld [vmem:[#allocation2 + $0x320] ss:$16 sps:$4 sm:$0xff]  }
  0x44   :  { %v2971_v63 = vld [vmem:[#allocation2 + $0x104] ss:$16 sps:$4 sm:$0xff]   ;;  %v2975_v2 = vld [vmem:[#allocation2 + $0x100] ss:$16 sps:$4 sm:$0xff]  }
  0x45   :  { %1039 = vmatpush1.bf16.msra.mxu0 %v2927_v34  ;;  %1082 = vmatpush1.bf16.msra.mxu1 %v2928_v36  ;;  %v2973_v1 = vld [vmem:[#allocation2 + $0x304] ss:$16 sps:$4 sm:$0xff]   ;;  %v2976_v4 = vld [vmem:[#allocation2 + $0x300] ss:$16 sps:$4 sm:$0xff]  }
  0x46   :  { %1040 = vmatprep.subr.bf16.mxu0 %v2929_v35  ;;  %1083 = vmatprep.subr.bf16.mxu1 %v2931_v37  ;;  %v76_v12 = vld [vmem:[%s3511_s1] sm:$0xff] }
  0x47   :  { %v143_v17 = vrot.slane %v76_v12, %v3435_v8  ;;  %v147_v18 = vrot.slane %v76_v12, %v3437_v9  ;;  %v151_v19 = vrot.slane %v76_v12, %v150_v10  ;;  %v155_v20 = vrot.slane %v76_v12, %v154_v11  ;;  %v192_v33 = vld [vmem:[%s3512_s2] sm:$0xf] }
  0x48   :  { %v91_v21 = vrot.slane %v76_v12, %v3442_v13  ;;  %v95_v22 = vrot.slane %v76_v12, %v3444_v14  ;;  %v99_v23 = vrot.slane %v76_v12, %v98_v15  ;;  %v103_v24 = vrot.slane %v76_v12, %v102_v16 }
  0x49   :  { %1041 = vmatpush2.bf16.msra.mxu0 %v2933_v38  ;;  %1084 = vmatpush2.bf16.msra.mxu1 %v2934_v40  ;;  %v163_v25 = vrot.slane %v143_v17, %v3435_v8  ;;  %v167_v26 = vrot.slane %v147_v18, %v3435_v8  ;;  %v171_v27 = vrot.slane %v151_v19, %v3435_v8 }
  0x4a   :  { %1042 = vmatprep.subr.bf16.mxu0 %v2935_v39  ;;  %1085 = vmatprep.subr.bf16.mxu1 %v2937_v41  ;;  %v175_v28 = vrot.slane %v155_v20, %v3435_v8  ;;  %v111_v29 = vrot.slane %v91_v21, %v3442_v13  ;;  %v115_v30 = vrot.slane %v95_v22, %v3442_v13  ;;  %v2977_v20 = vld [vmem:[#allocation2 + $0xe8] ss:$16 sps:$4 sm:$0xff]  }
  0x4b   :  { %v119_v31 = vrot.slane %v99_v23, %v3442_v13  ;;  %v123_v32 = vrot.slane %v103_v24, %v3442_v13  ;;  %v2980_v21 = vld [vmem:[#allocation2 + $0x2e8] ss:$16 sps:$4 sm:$0xff]  }
  0x4d   :  { %1043 = vmatpush2.bf16.msra.mxu0 %v2939_v42  ;;  %1086 = vmatpush2.bf16.msra.mxu1 %v2940_v44  ;;  %v201_v44 = vrot.slane %v192_v33, %v3435_v8 }
  0x4e   :  { %1044 = vmatprep.subr.bf16.mxu0 %v2941_v43  ;;  %1087 = vmatprep.subr.bf16.mxu1 %v2943_v45  ;;  %v209_v45 = vrot.slane %v192_v33, %v3437_v9 }
  0x51   :  { %1045 = vmatpush2.bf16.msra.mxu0 %v2945_v46  ;;  %1088 = vmatpush2.bf16.msra.mxu1 %v2946_v48  ;;  %v197_v46 = vrot.slane %v192_v33, %v3442_v13 }
  0x52   :  { %1046 = vmatprep.subr.bf16.mxu0 %v2947_v47  ;;  %1089 = vmatprep.subr.bf16.mxu1 %v2949_v49  ;;  %v205_v47 = vrot.slane %v192_v33, %v3444_v14  ;;  %v2994_v33 = vld [vmem:[#allocation2 + $0x2ac] ss:$16 sps:$4 sm:$0xff]  }
  0x55   :  { %1047 = vmatpush2.bf16.msra.mxu0 %v2951_v50  ;;  %1090 = vmatpush2.bf16.msra.mxu1 %v2952_v52 }
  0x56   :  { %1048 = vmatprep.subr.bf16.mxu0 %v2953_v51  ;;  %1091 = vmatprep.subr.bf16.mxu1 %v2955_v53 }
  0x59   :  { %1049 = vmatpush2.bf16.msra.mxu0 %v2957_v54  ;;  %1092 = vmatpush2.bf16.msra.mxu1 %v2958_v56 }
  0x5a   :  { %1050 = vmatprep.subr.bf16.mxu0 %v2959_v55  ;;  %1093 = vmatprep.subr.bf16.mxu1 %v2961_v57 }
  0x5d   :  { %1051 = vmatpush2.bf16.msra.mxu0 %v2963_v58  ;;  %1094 = vmatpush2.bf16.msra.mxu1 %v2964_v60 }
  0x5e   :  { %1052 = vmatprep.subr.bf16.mxu0 %v2965_v59  ;;  %1095 = vmatprep.subr.bf16.mxu1 %v2967_v61 }
  0x61   :  { %1053 = vmatpush2.bf16.msra.mxu0 %v2969_v62  ;;  %1096 = vmatpush2.bf16.msra.mxu1 %v2970_v0 }
  0x62   :  { %1054 = vmatprep.subr.bf16.mxu0 %v2971_v63  ;;  %1097 = vmatprep.subr.bf16.mxu1 %v2973_v1 }
  0x65   :  { %1055 = vmatpush2.bf16.msra.mxu0 %v2975_v2  ;;  %1098 = vmatpush2.bf16.msra.mxu1 %v2976_v4 }
  0x66   :  { %1110 = vmatprep.subr.bf16.mxu0 %v2979_v3  ;;  %1153 = vmatprep.subr.bf16.mxu1 %v2982_v5 }
  0xa2   :  { %v134_v34 = vpop.permute.xlu1 %133  ;;  %v80_v35 = vpop.permute.xlu0 %79 }
  0xa3   :  { %v176_v36 = vmul.f32 %v163_v25, %v134_v34  ;;  %v177_v37 = vmul.f32 %v167_v26, %v134_v34  ;;  %v178_v38 = vmul.f32 %v171_v27, %v134_v34  ;;  %v179_v39 = vmul.f32 %v175_v28, %v134_v34  ;;  %v2989_v34 = vld [vmem:[#allocation2 + $0xa8] ss:$16 sps:$4 sm:$0xff]  }
  0xa4   :  { %v124_v40 = vmul.f32 %v111_v29, %v80_v35  ;;  %v125_v41 = vmul.f32 %v115_v30, %v80_v35  ;;  %v126_v42 = vmul.f32 %v119_v31, %v80_v35  ;;  %v127_v43 = vmul.f32 %v123_v32, %v80_v35  ;;  %v2992_v35 = vld [vmem:[#allocation2 + $0x2a8] ss:$16 sps:$4 sm:$0xff]  }
  0xa6   :  { %v138_v48 = vpop.permute.xlu1 %137  ;;  %v85_v49 = vpop.permute.xlu0 %84  ;;  %v185_v50 = vadd.f32 %v177_v37, %v125_v41  ;;  %v187_v51 = vadd.f32 %v179_v39, %v127_v43  ;;  %v184_v52 = vadd.f32 %v176_v36, %v124_v40  ;;  %v186_v53 = vadd.f32 %v178_v38, %v126_v42  ;;  %v2997_v36 = vld [vmem:[#allocation2 + $0x8c] ss:$16 sps:$4 sm:$0xff]   ;;  %v2995_v38 = vld [vmem:[#allocation2 + $0x88] ss:$16 sps:$4 sm:$0xff]  }
  0xa7   :  { %v180_v54 = vmul.f32 %v163_v25, %v138_v48  ;;  %v181_v55 = vmul.f32 %v167_v26, %v138_v48  ;;  %v182_v56 = vmul.f32 %v171_v27, %v138_v48  ;;  %v183_v57 = vmul.f32 %v175_v28, %v138_v48  ;;  %v2985_v28 = vld [vmem:[#allocation2 + $0xcc] ss:$16 sps:$4 sm:$0xff]   ;;  %v2998_v39 = vld [vmem:[#allocation2 + $0x288] ss:$16 sps:$4 sm:$0xff]  }
  0xa8   :  { %v128_v58 = vmul.f32 %v111_v29, %v85_v49  ;;  %v129_v59 = vmul.f32 %v115_v30, %v85_v49  ;;  %v130_v60 = vmul.f32 %v119_v31, %v85_v49  ;;  %v131_v61 = vmul.f32 %v123_v32, %v85_v49  ;;  %v2988_v29 = vld [vmem:[#allocation2 + $0x2cc] ss:$16 sps:$4 sm:$0xff]   ;;  %v2983_v30 = vld [vmem:[#allocation2 + $0xc8] ss:$16 sps:$4 sm:$0xff]  }
  0xa9   :  { %v215_v62 = vadd.f32 %v201_v44, %v185_v50  ;;  %v217_v63 = vadd.f32 %v209_v45, %v187_v51  ;;  %v214_v0 = vadd.f32 %v197_v46, %v184_v52  ;;  %v216_v1 = vadd.f32 %v205_v47, %v186_v53  ;;  %v2986_v31 = vld [vmem:[#allocation2 + $0x2c8] ss:$16 sps:$4 sm:$0xff]   ;;  %v2991_v32 = vld [vmem:[#allocation2 + $0xac] ss:$16 sps:$4 sm:$0xff]  }
  0xaa   :  { %v188_v2 = vadd.f32 %v180_v54, %v128_v58  ;;  %v189_v3 = vadd.f32 %v181_v55, %v129_v59  ;;  %v190_v4 = vadd.f32 %v182_v56, %v130_v60  ;;  %v191_v5 = vadd.f32 %v183_v57, %v131_v61  ;;  %v3000_v37 = vld [vmem:[#allocation2 + $0x28c] ss:$16 sps:$4 sm:$0xff]   ;;  %v3001_v42 = vld [vmem:[#allocation2 + $0x68] ss:$16 sps:$4 sm:$0xff]  }
  0xab   :  { %v223_v6 = vmax.f32 %v215_v62, 0.0  ;;  %v225_v15 = vmax.f32 %v217_v63, 0.0  ;;  %v222_v16 = vmax.f32 %v214_v0, 0.0  ;;  %v224_v17 = vmax.f32 %v216_v1, 0.0  ;;  %v3003_v40 = vld [vmem:[#allocation2 + $0x6c] ss:$16 sps:$4 sm:$0xff]  }
  0xac   :  { %v219_v7 = vadd.f32 %v201_v44, %v189_v3  ;;  %v221_v10 = vadd.f32 %v209_v45, %v191_v5  ;;  %v218_v11 = vadd.f32 %v197_v46, %v188_v2  ;;  %v220_v12 = vadd.f32 %v205_v47, %v190_v4  ;;  %v3006_v41 = vld [vmem:[#allocation2 + $0x26c] ss:$16 sps:$4 sm:$0xff]   ;;  %v3004_v43 = vld [vmem:[#allocation2 + $0x268] ss:$16 sps:$4 sm:$0xff]  }
  0xad   :  { %v3009_v44 = vld [vmem:[#allocation2 + $0x4c] ss:$16 sps:$4 sm:$0xff]   ;;  %v3007_v46 = vld [vmem:[#allocation2 + $0x48] ss:$16 sps:$4 sm:$0xff]  }
  0xae   :  { %v227_v18 = vmax.f32 %v219_v7, 0.0  ;;  %v229_v19 = vmax.f32 %v221_v10, 0.0  ;;  %v226_v22 = vmax.f32 %v218_v11, 0.0  ;;  %v228_v23 = vmax.f32 %v220_v12, 0.0  ;;  %v3012_v45 = vld [vmem:[#allocation2 + $0x24c] ss:$16 sps:$4 sm:$0xff]  }
  0xaf   :  { %v3010_v47 = vld [vmem:[#allocation2 + $0x248] ss:$16 sps:$4 sm:$0xff]   ;;  %v3015_v48 = vld [vmem:[#allocation2 + $0x2c] ss:$16 sps:$4 sm:$0xff]  }
  0xb0   :  { %v231_v24 = vpack.c.bf16 %v227_v18, %v223_v6  ;;  %v233_v25 = vpack.c.bf16 %v229_v19, %v225_v15  ;;  %v3465_v26 = vpack.c.bf16 %v226_v22, %v222_v16  ;;  %v3467_v27 = vpack.c.bf16 %v228_v23, %v224_v17  ;;  %v3018_v49 = vld [vmem:[#allocation2 + $0x22c] ss:$16 sps:$4 sm:$0xff]   ;;  %v3013_v50 = vld [vmem:[#allocation2 + $0x28] ss:$16 sps:$4 sm:$0xff]  }
  0xb1   :  { %v3016_v51 = vld [vmem:[#allocation2 + $0x228] ss:$16 sps:$4 sm:$0xff]   ;;  %v3021_v52 = vld [vmem:[#allocation2 + $0xc] ss:$16 sps:$4 sm:$0xff]  }
  0xb2   :  { %1056 = vmatprep.mubr.bf16.mxu0 %v231_v24  ;;  %1099 = vmatprep.mubr.bf16.mxu1 %v233_v25  ;;  %v3024_v53 = vld [vmem:[#allocation2 + $0x20c] ss:$16 sps:$4 sm:$0xff]   ;;  %v3019_v54 = vld [vmem:[#allocation2 + $0x8] ss:$16 sps:$4 sm:$0xff]  }
  0xb3   :  { %1057 = vmatmul.mubr.bf16.vlgmr.msra.gmra.mxu0 %v3465_v26  ;;  %1100 = vmatmul.mubr.bf16.vlgmr.msra.gmra.mxu1 %v3467_v27  ;;  %v3022_v55 = vld [vmem:[#allocation2 + $0x208] ss:$16 sps:$4 sm:$0xff]   ;;  %v3027_v56 = vld [vmem:[#allocation2 + $0x1ec] ss:$16 sps:$4 sm:$0xff]  }
  0xb4   :  { %1111 = vmatpush1.bf16.msra.mxu0 %v2977_v20  ;;  %1154 = vmatpush1.bf16.msra.mxu1 %v2980_v21  ;;  %v3030_v57 = vld [vmem:[#allocation2 + $0x3ec] ss:$16 sps:$4 sm:$0xff]   ;;  %v3025_v58 = vld [vmem:[#allocation2 + $0x1e8] ss:$16 sps:$4 sm:$0xff]  }
  0xb5   :  { %1142 = vmatprep.mubr.bf16.mxu0 %v231_v24  ;;  %1185 = vmatprep.mubr.bf16.mxu1 %v233_v25  ;;  %v3028_v59 = vld [vmem:[#allocation2 + $0x3e8] ss:$16 sps:$4 sm:$0xff]   ;;  %v3033_v60 = vld [vmem:[#allocation2 + $0x1cc] ss:$16 sps:$4 sm:$0xff]  }
  0xb6   :  { %1112 = vmatprep.subr.bf16.mxu0 %v2985_v28  ;;  %1155 = vmatprep.subr.bf16.mxu1 %v2988_v29  ;;  %v3036_v61 = vld [vmem:[#allocation2 + $0x3cc] ss:$16 sps:$4 sm:$0xff]   ;;  %v3031_v62 = vld [vmem:[#allocation2 + $0x1c8] ss:$16 sps:$4 sm:$0xff]  }
  0xb7   :  { %v3034_v63 = vld [vmem:[#allocation2 + $0x3c8] ss:$16 sps:$4 sm:$0xff]   ;;  %v3039_v0 = vld [vmem:[#allocation2 + $0x1ac] ss:$16 sps:$4 sm:$0xff]  }
  0xb8   :  { %1113 = vmatpush1.bf16.msra.mxu0 %v2983_v30  ;;  %1156 = vmatpush1.bf16.msra.mxu1 %v2986_v31  ;;  %v3042_v1 = vld [vmem:[#allocation2 + $0x3ac] ss:$16 sps:$4 sm:$0xff]   ;;  %v3037_v2 = vld [vmem:[#allocation2 + $0x1a8] ss:$16 sps:$4 sm:$0xff]   ;;  %v3075_v30 = vld [vmem:[#allocation4 + $0xe4] ss:$16 sps:$4 sm:$0xff]  }
  0xb9   :  { %1114 = vmatprep.subr.bf16.mxu0 %v2991_v32  ;;  %1157 = vmatprep.subr.bf16.mxu1 %v2994_v33  ;;  %v3040_v3 = vld [vmem:[#allocation2 + $0x3a8] ss:$16 sps:$4 sm:$0xff]   ;;  %v3045_v4 = vld [vmem:[#allocation2 + $0x18c] ss:$16 sps:$4 sm:$0xff]   ;;  %v3073_v31 = vld [vmem:[#allocation4 + $0xe0] ss:$16 sps:$4 sm:$0xff]  }
  0xba   :  { %v3048_v5 = vld [vmem:[#allocation2 + $0x38c] ss:$16 sps:$4 sm:$0xff]   ;;  %v3043_v6 = vld [vmem:[#allocation2 + $0x188] ss:$16 sps:$4 sm:$0xff]   ;;  %v3078_v32 = vld [vmem:[#allocation4 + $0xc4] ss:$16 sps:$4 sm:$0xff]  }
  0xbb   :  { %v3046_v7 = vld [vmem:[#allocation2 + $0x388] ss:$16 sps:$4 sm:$0xff]   ;;  %v3051_v10 = vld [vmem:[#allocation2 + $0x16c] ss:$16 sps:$4 sm:$0xff]   ;;  %v3076_v33 = vld [vmem:[#allocation4 + $0xc0] ss:$16 sps:$4 sm:$0xff]  }
  0xbc   :  { %1115 = vmatpush1.bf16.msra.mxu0 %v2989_v34  ;;  %1158 = vmatpush1.bf16.msra.mxu1 %v2992_v35  ;;  %v3054_v11 = vld [vmem:[#allocation2 + $0x36c] ss:$16 sps:$4 sm:$0xff]   ;;  %v3049_v12 = vld [vmem:[#allocation2 + $0x168] ss:$16 sps:$4 sm:$0xff]   ;;  %v3081_v34 = vld [vmem:[#allocation4 + $0xa4] ss:$16 sps:$4 sm:$0xff]  }
  0xbd   :  { %1116 = vmatprep.subr.bf16.mxu0 %v2997_v36  ;;  %1159 = vmatprep.subr.bf16.mxu1 %v3000_v37  ;;  %v3052_v15 = vld [vmem:[#allocation2 + $0x368] ss:$16 sps:$4 sm:$0xff]   ;;  %v3057_v16 = vld [vmem:[#allocation2 + $0x14c] ss:$16 sps:$4 sm:$0xff]   ;;  %v3079_v35 = vld [vmem:[#allocation4 + $0xa0] ss:$16 sps:$4 sm:$0xff]  }
  0xbe   :  { %v3060_v17 = vld [vmem:[#allocation2 + $0x34c] ss:$16 sps:$4 sm:$0xff]   ;;  %v3055_v18 = vld [vmem:[#allocation2 + $0x148] ss:$16 sps:$4 sm:$0xff]   ;;  %v3084_v36 = vld [vmem:[#allocation4 + $0x84] ss:$16 sps:$4 sm:$0xff]  }
  0xbf   :  { %v3058_v19 = vld [vmem:[#allocation2 + $0x348] ss:$16 sps:$4 sm:$0xff]   ;;  %v3063_v20 = vld [vmem:[#allocation2 + $0x12c] ss:$16 sps:$4 sm:$0xff]   ;;  %v3082_v37 = vld [vmem:[#allocation4 + $0x80] ss:$16 sps:$4 sm:$0xff]  }
  0xc0   :  { %1117 = vmatpush1.bf16.msra.mxu0 %v2995_v38  ;;  %1160 = vmatpush1.bf16.msra.mxu1 %v2998_v39  ;;  %v3066_v21 = vld [vmem:[#allocation2 + $0x32c] ss:$16 sps:$4 sm:$0xff]   ;;  %v3061_v22 = vld [vmem:[#allocation2 + $0x128] ss:$16 sps:$4 sm:$0xff]   ;;  %v3087_v38 = vld [vmem:[#allocation4 + $0x64] ss:$16 sps:$4 sm:$0xff]  }
  0xc1   :  { %1118 = vmatprep.subr.bf16.mxu0 %v3003_v40  ;;  %1161 = vmatprep.subr.bf16.mxu1 %v3006_v41  ;;  %v3064_v23 = vld [vmem:[#allocation2 + $0x328] ss:$16 sps:$4 sm:$0xff]   ;;  %v3069_v24 = vld [vmem:[#allocation2 + $0x10c] ss:$16 sps:$4 sm:$0xff]   ;;  %v3085_v39 = vld [vmem:[#allocation4 + $0x60] ss:$16 sps:$4 sm:$0xff]  }
  0xc2   :  { %v3072_v25 = vld [vmem:[#allocation2 + $0x30c] ss:$16 sps:$4 sm:$0xff]   ;;  %v3067_v28 = vld [vmem:[#allocation2 + $0x108] ss:$16 sps:$4 sm:$0xff]   ;;  %v3121_v40 = vld [vmem:[#allocation4 + $0x2e0] ss:$16 sps:$4 sm:$0xff]  }
  0xc3   :  { %v3070_v29 = vld [vmem:[#allocation2 + $0x308] ss:$16 sps:$4 sm:$0xff]   ;;  %v3123_v41 = vld [vmem:[#allocation4 + $0x2e4] ss:$16 sps:$4 sm:$0xff]  }
  0xc4   :  { %1119 = vmatpush1.bf16.msra.mxu0 %v3001_v42  ;;  %1162 = vmatpush1.bf16.msra.mxu1 %v3004_v43  ;;  %v3127_v42 = vld [vmem:[#allocation4 + $0x2c0] ss:$16 sps:$4 sm:$0xff]   ;;  %v3129_v43 = vld [vmem:[#allocation4 + $0x2c4] ss:$16 sps:$4 sm:$0xff]  }
  0xc5   :  { %1120 = vmatprep.subr.bf16.mxu0 %v3009_v44  ;;  %1163 = vmatprep.subr.bf16.mxu1 %v3012_v45  ;;  %v3093_v44 = vld [vmem:[#allocation4 + $0x24] ss:$16 sps:$4 sm:$0xff]   ;;  %v3091_v45 = vld [vmem:[#allocation4 + $0x20] ss:$16 sps:$4 sm:$0xff]  }
  0xc8   :  { %1121 = vmatpush1.bf16.msra.mxu0 %v3007_v46  ;;  %1164 = vmatpush1.bf16.msra.mxu1 %v3010_v47  ;;  %v3133_v46 = vld [vmem:[#allocation4 + $0x2a0] ss:$16 sps:$4 sm:$0xff]   ;;  %v3135_v47 = vld [vmem:[#allocation4 + $0x2a4] ss:$16 sps:$4 sm:$0xff]  }
  0xc9   :  { %1122 = vmatprep.subr.bf16.mxu0 %v3015_v48  ;;  %1165 = vmatprep.subr.bf16.mxu1 %v3018_v49  ;;  %v3096_v48 = vld [vmem:[#allocation4 + $0x4] ss:$16 sps:$4 sm:$0xff]   ;;  %v3094_v49 = vld [vmem:[#allocation4] ss:$16 sps:$4 sm:$0xff]  }
  0xcc   :  { %1123 = vmatpush1.bf16.msra.mxu0 %v3013_v50  ;;  %1166 = vmatpush1.bf16.msra.mxu1 %v3016_v51  ;;  %v3139_v50 = vld [vmem:[#allocation4 + $0x280] ss:$16 sps:$4 sm:$0xff]   ;;  %v3141_v51 = vld [vmem:[#allocation4 + $0x284] ss:$16 sps:$4 sm:$0xff]  }
  0xcd   :  { %1124 = vmatprep.subr.bf16.mxu0 %v3021_v52  ;;  %1167 = vmatprep.subr.bf16.mxu1 %v3024_v53  ;;  %v3099_v52 = vld [vmem:[#allocation4 + $0x1e4] ss:$16 sps:$4 sm:$0xff]   ;;  %v3097_v53 = vld [vmem:[#allocation4 + $0x1e0] ss:$16 sps:$4 sm:$0xff]  }
  0xd0   :  { %1125 = vmatpush1.bf16.msra.mxu0 %v3019_v54  ;;  %1168 = vmatpush1.bf16.msra.mxu1 %v3022_v55  ;;  %v3145_v54 = vld [vmem:[#allocation4 + $0x260] ss:$16 sps:$4 sm:$0xff]   ;;  %v3147_v55 = vld [vmem:[#allocation4 + $0x264] ss:$16 sps:$4 sm:$0xff]  }
  0xd1   :  { %1126 = vmatprep.subr.bf16.mxu0 %v3027_v56  ;;  %1169 = vmatprep.subr.bf16.mxu1 %v3030_v57  ;;  %v3102_v56 = vld [vmem:[#allocation4 + $0x1c4] ss:$16 sps:$4 sm:$0xff]   ;;  %v3100_v57 = vld [vmem:[#allocation4 + $0x1c0] ss:$16 sps:$4 sm:$0xff]  }
  0xd4   :  { %1127 = vmatpush2.bf16.msra.mxu0 %v3025_v58  ;;  %1170 = vmatpush2.bf16.msra.mxu1 %v3028_v59  ;;  %v3151_v58 = vld [vmem:[#allocation4 + $0x240] ss:$16 sps:$4 sm:$0xff]   ;;  %v3153_v59 = vld [vmem:[#allocation4 + $0x244] ss:$16 sps:$4 sm:$0xff]  }
  0xd5   :  { %1128 = vmatprep.subr.bf16.mxu0 %v3033_v60  ;;  %1171 = vmatprep.subr.bf16.mxu1 %v3036_v61  ;;  %v3105_v60 = vld [vmem:[#allocation4 + $0x1a4] ss:$16 sps:$4 sm:$0xff]   ;;  %v3103_v61 = vld [vmem:[#allocation4 + $0x1a0] ss:$16 sps:$4 sm:$0xff]  }
  0xd8   :  { %1129 = vmatpush2.bf16.msra.mxu0 %v3031_v62  ;;  %1172 = vmatpush2.bf16.msra.mxu1 %v3034_v63  ;;  %v3157_v62 = vld [vmem:[#allocation4 + $0x220] ss:$16 sps:$4 sm:$0xff]   ;;  %v3159_v63 = vld [vmem:[#allocation4 + $0x224] ss:$16 sps:$4 sm:$0xff]  }
  0xd9   :  { %1130 = vmatprep.subr.bf16.mxu0 %v3039_v0  ;;  %1173 = vmatprep.subr.bf16.mxu1 %v3042_v1  ;;  %v3108_v0 = vld [vmem:[#allocation4 + $0x184] ss:$16 sps:$4 sm:$0xff]   ;;  %v3106_v1 = vld [vmem:[#allocation4 + $0x180] ss:$16 sps:$4 sm:$0xff]  }
  0xdc   :  { %1131 = vmatpush2.bf16.msra.mxu0 %v3037_v2  ;;  %1174 = vmatpush2.bf16.msra.mxu1 %v3040_v3  ;;  %v3163_v2 = vld [vmem:[#allocation4 + $0x200] ss:$16 sps:$4 sm:$0xff]   ;;  %v3165_v3 = vld [vmem:[#allocation4 + $0x204] ss:$16 sps:$4 sm:$0xff]  }
  0xdd   :  { %1132 = vmatprep.subr.bf16.mxu0 %v3045_v4  ;;  %1175 = vmatprep.subr.bf16.mxu1 %v3048_v5  ;;  %v3111_v4 = vld [vmem:[#allocation4 + $0x164] ss:$16 sps:$4 sm:$0xff]   ;;  %v3109_v5 = vld [vmem:[#allocation4 + $0x160] ss:$16 sps:$4 sm:$0xff]  }
  0xe0   :  { %1133 = vmatpush2.bf16.msra.mxu0 %v3043_v6  ;;  %1176 = vmatpush2.bf16.msra.mxu1 %v3046_v7  ;;  %v3169_v6 = vld [vmem:[#allocation4 + $0x3e0] ss:$16 sps:$4 sm:$0xff]   ;;  %v3171_v7 = vld [vmem:[#allocation4 + $0x3e4] ss:$16 sps:$4 sm:$0xff]  }
  0xe1   :  { %1134 = vmatprep.subr.bf16.mxu0 %v3051_v10  ;;  %1177 = vmatprep.subr.bf16.mxu1 %v3054_v11  ;;  %v3114_v10 = vld [vmem:[#allocation4 + $0x144] ss:$16 sps:$4 sm:$0xff]   ;;  %v3112_v11 = vld [vmem:[#allocation4 + $0x140] ss:$16 sps:$4 sm:$0xff]  }
  0xe4   :  { %1135 = vmatpush2.bf16.msra.mxu0 %v3049_v12  ;;  %1178 = vmatpush2.bf16.msra.mxu1 %v3052_v15  ;;  %v3175_v12 = vld [vmem:[#allocation4 + $0x3c0] ss:$16 sps:$4 sm:$0xff]   ;;  %v3177_v15 = vld [vmem:[#allocation4 + $0x3c4] ss:$16 sps:$4 sm:$0xff]  }
  0xe5   :  { %1136 = vmatprep.subr.bf16.mxu0 %v3057_v16  ;;  %1179 = vmatprep.subr.bf16.mxu1 %v3060_v17  ;;  %v3117_v16 = vld [vmem:[#allocation4 + $0x124] ss:$16 sps:$4 sm:$0xff]   ;;  %v3115_v17 = vld [vmem:[#allocation4 + $0x120] ss:$16 sps:$4 sm:$0xff]  }
  0xe8   :  { %1137 = vmatpush2.bf16.msra.mxu0 %v3055_v18  ;;  %1180 = vmatpush2.bf16.msra.mxu1 %v3058_v19  ;;  %v3181_v18 = vld [vmem:[#allocation4 + $0x3a0] ss:$16 sps:$4 sm:$0xff]   ;;  %v3183_v19 = vld [vmem:[#allocation4 + $0x3a4] ss:$16 sps:$4 sm:$0xff]  }
  0xe9   :  { %1138 = vmatprep.subr.bf16.mxu0 %v3063_v20  ;;  %1181 = vmatprep.subr.bf16.mxu1 %v3066_v21  ;;  %v3120_v20 = vld [vmem:[#allocation4 + $0x104] ss:$16 sps:$4 sm:$0xff]   ;;  %v3118_v21 = vld [vmem:[#allocation4 + $0x100] ss:$16 sps:$4 sm:$0xff]  }
  0xec   :  { %1139 = vmatpush2.bf16.msra.mxu0 %v3061_v22  ;;  %1182 = vmatpush2.bf16.msra.mxu1 %v3064_v23  ;;  %v3187_v22 = vld [vmem:[#allocation4 + $0x380] ss:$16 sps:$4 sm:$0xff]   ;;  %v3189_v23 = vld [vmem:[#allocation4 + $0x384] ss:$16 sps:$4 sm:$0xff]  }
  0xed   :  { %1140 = vmatprep.subr.bf16.mxu0 %v3069_v24  ;;  %1183 = vmatprep.subr.bf16.mxu1 %v3072_v25  ;;  %v3126_v24 = vld [vmem:[#allocation4 + $0xec] ss:$16 sps:$4 sm:$0xff]   ;;  %v3193_v25 = vld [vmem:[#allocation4 + $0x360] ss:$16 sps:$4 sm:$0xff]  }
  0xf0   :  { %1141 = vmatpush2.bf16.msra.mxu0 %v3067_v28  ;;  %1184 = vmatpush2.bf16.msra.mxu1 %v3070_v29  ;;  %v3195_v28 = vld [vmem:[#allocation4 + $0x364] ss:$16 sps:$4 sm:$0xff]  }
  0xf1   :  { %1998 = vmatprep.subr.bf16.mxu0 %v3075_v30  ;;  %2041 = vmatprep.subr.bf16.mxu1 %v3123_v41  ;;  %v3201_v29 = vld [vmem:[#allocation4 + $0x344] ss:$16 sps:$4 sm:$0xff]   ;;  %v3199_v30 = vld [vmem:[#allocation4 + $0x340] ss:$16 sps:$4 sm:$0xff]  }
  0xf3   :  { %1143 = vmatmul.mubr.bf16.vlgmr.msra.gmra.mxu0 %v3465_v26  ;;  %1186 = vmatmul.mubr.bf16.vlgmr.msra.gmra.mxu1 %v3467_v27  ;;  %v3090_v26 = vld [vmem:[#allocation4 + $0x44] ss:$16 sps:$4 sm:$0xff]   ;;  %v3088_v27 = vld [vmem:[#allocation4 + $0x40] ss:$16 sps:$4 sm:$0xff]  }
  0xf4   :  { %1999 = vmatpush1.bf16.msra.mxu0 %v3073_v31  ;;  %2042 = vmatpush1.bf16.msra.mxu1 %v3121_v40  ;;  %v3207_v31 = vld [vmem:[#allocation4 + $0x324] ss:$16 sps:$4 sm:$0xff]  }
  0xf5   :  { %2000 = vmatprep.subr.bf16.mxu0 %v3078_v32  ;;  %2043 = vmatprep.subr.bf16.mxu1 %v3129_v43  ;;  %v3205_v32 = vld [vmem:[#allocation4 + $0x320] ss:$16 sps:$4 sm:$0xff]  }
  0xf8   :  { %2001 = vmatpush1.bf16.msra.mxu0 %v3076_v33  ;;  %2044 = vmatpush1.bf16.msra.mxu1 %v3127_v42  ;;  %v3213_v33 = vld [vmem:[#allocation4 + $0x304] ss:$16 sps:$4 sm:$0xff]  }
  0xf9   :  { %2002 = vmatprep.subr.bf16.mxu0 %v3081_v34  ;;  %2045 = vmatprep.subr.bf16.mxu1 %v3135_v47  ;;  %v3211_v34 = vld [vmem:[#allocation4 + $0x300] ss:$16 sps:$4 sm:$0xff]  }
  0xfc   :  { %2003 = vmatpush1.bf16.msra.mxu0 %v3079_v35  ;;  %2046 = vmatpush1.bf16.msra.mxu1 %v3133_v46  ;;  %v3219_v35 = vld [vmem:[#allocation4 + $0x2ec] ss:$16 sps:$4 sm:$0xff]  }
  0xfd   :  { %2004 = vmatprep.subr.bf16.mxu0 %v3084_v36  ;;  %2047 = vmatprep.subr.bf16.mxu1 %v3141_v51  ;;  %v3476_v36 = vld [vmem:[%s3514_s4] sm:$0xf] }
 0x100   :  { %2005 = vmatpush1.bf16.msra.mxu0 %v3082_v37  ;;  %2048 = vmatpush1.bf16.msra.mxu1 %v3139_v50  ;;  %v371_v37 = vrot.slane %v3476_v36, %v3435_v8 }
 0x101   :  { %2006 = vmatprep.subr.bf16.mxu0 %v3087_v38  ;;  %2049 = vmatprep.subr.bf16.mxu1 %v3147_v55  ;;  %v367_v38 = vrot.slane %v3476_v36, %v3442_v13 }
 0x104   :  { %2007 = vmatpush1.bf16.msra.mxu0 %v3085_v39  ;;  %2050 = vmatpush1.bf16.msra.mxu1 %v3145_v54 }
 0x105   :  { %2008 = vmatprep.subr.bf16.mxu0 %v3090_v26  ;;  %2051 = vmatprep.subr.bf16.mxu1 %v3153_v59 }
 0x108   :  { %2009 = vmatpush1.bf16.msra.mxu0 %v3088_v27  ;;  %2052 = vmatpush1.bf16.msra.mxu1 %v3151_v58  ;;  %v3124_v58 = vld [vmem:[#allocation4 + $0xe8] ss:$16 sps:$4 sm:$0xff]  }
 0x109   :  { %2010 = vmatprep.subr.bf16.mxu0 %v3093_v44  ;;  %2053 = vmatprep.subr.bf16.mxu1 %v3159_v63  ;;  %v3136_v63 = vld [vmem:[#allocation4 + $0xa8] ss:$16 sps:$4 sm:$0xff]  }
 0x10c   :  { %2011 = vmatpush1.bf16.msra.mxu0 %v3091_v45  ;;  %2054 = vmatpush1.bf16.msra.mxu1 %v3157_v62  ;;  %v3138_v62 = vld [vmem:[#allocation4 + $0xac] ss:$16 sps:$4 sm:$0xff]  }
 0x10d   :  { %2012 = vmatprep.subr.bf16.mxu0 %v3096_v48  ;;  %2055 = vmatprep.subr.bf16.mxu1 %v3165_v3  ;;  %v3148_v3 = vld [vmem:[#allocation4 + $0x68] ss:$16 sps:$4 sm:$0xff]  }
 0x110   :  { %2013 = vmatpush1.bf16.msra.mxu0 %v3094_v49  ;;  %2056 = vmatpush1.bf16.msra.mxu1 %v3163_v2  ;;  %v3150_v2 = vld [vmem:[#allocation4 + $0x6c] ss:$16 sps:$4 sm:$0xff]  }
 0x111   :  { %2014 = vmatprep.subr.bf16.mxu0 %v3099_v52  ;;  %2057 = vmatprep.subr.bf16.mxu1 %v3171_v7  ;;  %v3160_v7 = vld [vmem:[#allocation4 + $0x28] ss:$16 sps:$4 sm:$0xff]  }
 0x114   :  { %2015 = vmatpush2.bf16.msra.mxu0 %v3097_v53  ;;  %2058 = vmatpush2.bf16.msra.mxu1 %v3169_v6  ;;  %v3162_v6 = vld [vmem:[#allocation4 + $0x2c] ss:$16 sps:$4 sm:$0xff]  }
 0x115   :  { %2016 = vmatprep.subr.bf16.mxu0 %v3102_v56  ;;  %2059 = vmatprep.subr.bf16.mxu1 %v3177_v15  ;;  %v3172_v15 = vld [vmem:[#allocation4 + $0x1e8] ss:$16 sps:$4 sm:$0xff]  }
 0x118   :  { %2017 = vmatpush2.bf16.msra.mxu0 %v3100_v57  ;;  %2060 = vmatpush2.bf16.msra.mxu1 %v3175_v12  ;;  %v3174_v12 = vld [vmem:[#allocation4 + $0x1ec] ss:$16 sps:$4 sm:$0xff]  }
 0x119   :  { %2018 = vmatprep.subr.bf16.mxu0 %v3105_v60  ;;  %2061 = vmatprep.subr.bf16.mxu1 %v3183_v19  ;;  %v3132_v60 = vld [vmem:[#allocation4 + $0xcc] ss:$16 sps:$4 sm:$0xff]   ;;  %v3184_v19 = vld [vmem:[#allocation4 + $0x1a8] ss:$16 sps:$4 sm:$0xff]  }
 0x11c   :  { %2019 = vmatpush2.bf16.msra.mxu0 %v3103_v61  ;;  %2062 = vmatpush2.bf16.msra.mxu1 %v3181_v18  ;;  %v3130_v61 = vld [vmem:[#allocation4 + $0xc8] ss:$16 sps:$4 sm:$0xff]   ;;  %v3186_v18 = vld [vmem:[#allocation4 + $0x1ac] ss:$16 sps:$4 sm:$0xff]  }
 0x11d   :  { %2020 = vmatprep.subr.bf16.mxu0 %v3108_v0  ;;  %2063 = vmatprep.subr.bf16.mxu1 %v3189_v23  ;;  %v3144_v0 = vld [vmem:[#allocation4 + $0x8c] ss:$16 sps:$4 sm:$0xff]   ;;  %v3196_v23 = vld [vmem:[#allocation4 + $0x168] ss:$16 sps:$4 sm:$0xff]  }
 0x120   :  { %2021 = vmatpush2.bf16.msra.mxu0 %v3106_v1  ;;  %2064 = vmatpush2.bf16.msra.mxu1 %v3187_v22  ;;  %v3142_v1 = vld [vmem:[#allocation4 + $0x88] ss:$16 sps:$4 sm:$0xff]   ;;  %v3198_v22 = vld [vmem:[#allocation4 + $0x16c] ss:$16 sps:$4 sm:$0xff]  }
 0x121   :  { %2022 = vmatprep.subr.bf16.mxu0 %v3111_v4  ;;  %2065 = vmatprep.subr.bf16.mxu1 %v3195_v28  ;;  %v3156_v4 = vld [vmem:[#allocation4 + $0x4c] ss:$16 sps:$4 sm:$0xff]   ;;  %v375_v28 = vrot.slane %v3476_v36, %v3444_v14 }
 0x124   :  { %2023 = vmatpush2.bf16.msra.mxu0 %v3109_v5  ;;  %2066 = vmatpush2.bf16.msra.mxu1 %v3193_v25  ;;  %v3154_v5 = vld [vmem:[#allocation4 + $0x48] ss:$16 sps:$4 sm:$0xff]   ;;  %v379_v25 = vrot.slane %v3476_v36, %v3437_v9 }
 0x125   :  { %2024 = vmatprep.subr.bf16.mxu0 %v3114_v10  ;;  %2067 = vmatprep.subr.bf16.mxu1 %v3201_v29  ;;  %v3168_v10 = vld [vmem:[#allocation4 + $0xc] ss:$16 sps:$4 sm:$0xff]  }
 0x128   :  { %2025 = vmatpush2.bf16.msra.mxu0 %v3112_v11  ;;  %2068 = vmatpush2.bf16.msra.mxu1 %v3199_v30  ;;  %v3166_v11 = vld [vmem:[#allocation4 + $0x8] ss:$16 sps:$4 sm:$0xff]  }
 0x129   :  { %2026 = vmatprep.subr.bf16.mxu0 %v3117_v16  ;;  %2069 = vmatprep.subr.bf16.mxu1 %v3207_v31  ;;  %v3180_v16 = vld [vmem:[#allocation4 + $0x1cc] ss:$16 sps:$4 sm:$0xff]   ;;  %v3202_v31 = vld [vmem:[#allocation4 + $0x148] ss:$16 sps:$4 sm:$0xff]  }
 0x12c   :  { %2027 = vmatpush2.bf16.msra.mxu0 %v3115_v17  ;;  %2070 = vmatpush2.bf16.msra.mxu1 %v3205_v32  ;;  %v3178_v17 = vld [vmem:[#allocation4 + $0x1c8] ss:$16 sps:$4 sm:$0xff]  }
 0x12d   :  { %2028 = vmatprep.subr.bf16.mxu0 %v3120_v20  ;;  %2071 = vmatprep.subr.bf16.mxu1 %v3213_v33  ;;  %v3192_v20 = vld [vmem:[#allocation4 + $0x18c] ss:$16 sps:$4 sm:$0xff]  }
 0x130   :  { %2029 = vmatpush2.bf16.msra.mxu0 %v3118_v21  ;;  %2072 = vmatpush2.bf16.msra.mxu1 %v3211_v34  ;;  %v3190_v21 = vld [vmem:[#allocation4 + $0x188] ss:$16 sps:$4 sm:$0xff]   ;;  %v3210_v34 = vld [vmem:[#allocation4 + $0x12c] ss:$16 sps:$4 sm:$0xff]  }
 0x131   :  { %2084 = vmatprep.subr.bf16.mxu0 %v3126_v24  ;;  %2127 = vmatprep.subr.bf16.mxu1 %v3219_v35  ;;  %v3204_v24 = vld [vmem:[#allocation4 + $0x14c] ss:$16 sps:$4 sm:$0xff]  }
 0x173   :  { %v1058_v39 = vpop.f32.mrf.mxu0  ;;  %v1101_v40 = vpop.f32.mrf.mxu1 }
 0x174   :  { %v1059_v42 = vadd.f32 %v1058_v39, %v367_v38 }
 0x175   :  { %v1060_v41 = vpop.f32.mrf.mxu0  ;;  %v1103_v26 = vpop.f32.mrf.mxu1 }
 0x176   :  { %v1061_v27 = vadd.f32 %v1060_v41, %v371_v37  ;;  %v1102_v50 = vadd.f32 %v1101_v40, %v1059_v42  ;;  %v3208_v41 = vld [vmem:[#allocation4 + $0x128] ss:$16 sps:$4 sm:$0xff]  }
 0x177   :  { %v1062_v43 = vpop.f32.mrf.mxu0  ;;  %v1105_v44 = vpop.f32.mrf.mxu1 }
 0x178   :  { %v1063_v45 = vadd.f32 %v1062_v43, %v367_v38  ;;  %v1104_v47 = vadd.f32 %v1103_v26, %v1061_v27  ;;  %v1196_v56 = vmax.f32 %v1102_v50, 0.0  ;;  %v3216_v27 = vld [vmem:[#allocation4 + $0x10c] ss:$16 sps:$4 sm:$0xff]  }
 0x179   :  { %v1064_v46 = vpop.f32.mrf.mxu0  ;;  %v1107_v51 = vpop.f32.mrf.mxu1 }
 0x17a   :  { %v1106_v48 = vadd.f32 %v1105_v44, %v1063_v45  ;;  %v1065_v49 = vadd.f32 %v1064_v46, %v371_v37  ;;  %v1197_v54 = vmax.f32 %v1104_v47, 0.0  ;;  %v3214_v47 = vld [vmem:[#allocation4 + $0x108] ss:$16 sps:$4 sm:$0xff]  }
 0x17c   :  { %v1108_v52 = vadd.f32 %v1107_v51, %v1065_v49  ;;  %v1200_v53 = vmax.f32 %v1106_v48, 0.0 }
 0x17e   :  { %v1201_v55 = vmax.f32 %v1108_v52, 0.0  ;;  %v3482_v59 = vpack.c.bf16 %v1200_v53, %v1196_v56  ;;  %v3217_v53 = vld [vmem:[#allocation4 + $0x2e8] ss:$16 sps:$4 sm:$0xff]  }
 0x17f   :  { %v3220_v56 = vld [vmem:[#allocation4 + $0x2c8] ss:$16 sps:$4 sm:$0xff]  }
 0x180   :  { %v1205_v57 = vpack.c.bf16 %v1201_v55, %v1197_v54  ;;  %v3222_v55 = vld [vmem:[#allocation4 + $0x2cc] ss:$16 sps:$4 sm:$0xff]  }
 0x182   :  { %2030 = vmatprep.mubr.bf16.mxu0 %v1205_v57 }
 0x183   :  { %2031 = vmatmul.mubr.bf16.vlgmr.msra.gmra.mxu0 %v3482_v59 }
 0x184   :  { %2085 = vmatpush1.bf16.msra.mxu0 %v3124_v58  ;;  %2116 = vmatprep.mubr.bf16.mxu0 %v1205_v57  ;;  %v3225_v57 = vld [vmem:[#allocation4 + $0x2ac] ss:$16 sps:$4 sm:$0xff]   ;;  %v3223_v58 = vld [vmem:[#allocation4 + $0x2a8] ss:$16 sps:$4 sm:$0xff]  }
 0x185   :  { %2086 = vmatprep.subr.bf16.mxu0 %v3132_v60  ;;  %v3228_v60 = vld [vmem:[#allocation4 + $0x28c] ss:$16 sps:$4 sm:$0xff]  }
 0x188   :  { %2087 = vmatpush1.bf16.msra.mxu0 %v3130_v61  ;;  %v3265_v61 = vld [vmem:[#allocation6 + $0x78] sm:$0xff]  }
 0x189   :  { %2088 = vmatprep.subr.bf16.mxu0 %v3138_v62  ;;  %v3266_v62 = vld [vmem:[#allocation6 + $0x38] sm:$0xff]  }
 0x18c   :  { %2089 = vmatpush1.bf16.msra.mxu0 %v3136_v63  ;;  %v3267_v63 = vld [vmem:[#allocation6 + $0x70] sm:$0xff]  }
 0x18d   :  { %2090 = vmatprep.subr.bf16.mxu0 %v3144_v0  ;;  %v3226_v0 = vld [vmem:[#allocation4 + $0x288] ss:$16 sps:$4 sm:$0xff]  }
 0x190   :  { %2091 = vmatpush1.bf16.msra.mxu0 %v3142_v1  ;;  %v3231_v1 = vld [vmem:[#allocation4 + $0x26c] ss:$16 sps:$4 sm:$0xff]  }
 0x191   :  { %2092 = vmatprep.subr.bf16.mxu0 %v3150_v2  ;;  %v3268_v2 = vld [vmem:[#allocation6 + $0x30] sm:$0xff]  }
 0x194   :  { %2093 = vmatpush1.bf16.msra.mxu0 %v3148_v3  ;;  %v3229_v3 = vld [vmem:[#allocation4 + $0x268] ss:$16 sps:$4 sm:$0xff]  }
 0x195   :  { %2094 = vmatprep.subr.bf16.mxu0 %v3156_v4  ;;  %v3234_v4 = vld [vmem:[#allocation4 + $0x24c] ss:$16 sps:$4 sm:$0xff]  }
 0x198   :  { %2095 = vmatpush1.bf16.msra.mxu0 %v3154_v5  ;;  %v3270_v5 = vld [vmem:[#allocation6 + $0x28] sm:$0xff]  }
 0x199   :  { %2096 = vmatprep.subr.bf16.mxu0 %v3162_v6  ;;  %v3271_v6 = vld [vmem:[#allocation6 + $0x60] sm:$0xff]  }
 0x19c   :  { %2097 = vmatpush1.bf16.msra.mxu0 %v3160_v7  ;;  %v3232_v7 = vld [vmem:[#allocation4 + $0x248] ss:$16 sps:$4 sm:$0xff]  }
 0x19d   :  { %2098 = vmatprep.subr.bf16.mxu0 %v3168_v10  ;;  %v3237_v10 = vld [vmem:[#allocation4 + $0x22c] ss:$16 sps:$4 sm:$0xff]  }
 0x1a0   :  { %2099 = vmatpush1.bf16.msra.mxu0 %v3166_v11  ;;  %v3272_v11 = vld [vmem:[#allocation6 + $0x20] sm:$0xff]  }
 0x1a1   :  { %2100 = vmatprep.subr.bf16.mxu0 %v3174_v12  ;;  %v3273_v12 = vld [vmem:[#allocation6 + $0x58] sm:$0xff]  }
 0x1a4   :  { %2101 = vmatpush2.bf16.msra.mxu0 %v3172_v15  ;;  %v3235_v15 = vld [vmem:[#allocation4 + $0x228] ss:$16 sps:$4 sm:$0xff]  }
 0x1a5   :  { %2102 = vmatprep.subr.bf16.mxu0 %v3180_v16  ;;  %v3240_v16 = vld [vmem:[#allocation4 + $0x20c] ss:$16 sps:$4 sm:$0xff]  }
 0x1a8   :  { %2103 = vmatpush2.bf16.msra.mxu0 %v3178_v17  ;;  %v3274_v17 = vld [vmem:[#allocation6 + $0x18] sm:$0xff]  }
 0x1a9   :  { %2104 = vmatprep.subr.bf16.mxu0 %v3186_v18  ;;  %v3238_v18 = vld [vmem:[#allocation4 + $0x208] ss:$16 sps:$4 sm:$0xff]  }
 0x1ac   :  { %2105 = vmatpush2.bf16.msra.mxu0 %v3184_v19  ;;  %v3243_v19 = vld [vmem:[#allocation4 + $0x3ec] ss:$16 sps:$4 sm:$0xff]  }
 0x1ad   :  { %2106 = vmatprep.subr.bf16.mxu0 %v3192_v20  ;;  %v3241_v20 = vld [vmem:[#allocation4 + $0x3e8] ss:$16 sps:$4 sm:$0xff]  }
 0x1b0   :  { %2107 = vmatpush2.bf16.msra.mxu0 %v3190_v21  ;;  %v3246_v21 = vld [vmem:[#allocation4 + $0x3cc] ss:$16 sps:$4 sm:$0xff]  }
 0x1b1   :  { %2108 = vmatprep.subr.bf16.mxu0 %v3198_v22  ;;  %v3244_v22 = vld [vmem:[#allocation4 + $0x3c8] ss:$16 sps:$4 sm:$0xff]  }
 0x1b3   :  { %v1144_v29 = vpop.f32.mrf.mxu0  ;;  %v1187_v30 = vpop.f32.mrf.mxu1 }
 0x1b4   :  { %2109 = vmatpush2.bf16.msra.mxu0 %v3196_v23  ;;  %v1145_v37 = vadd.f32 %v1144_v29, %v375_v28  ;;  %v3249_v23 = vld [vmem:[#allocation4 + $0x3ac] ss:$16 sps:$4 sm:$0xff]  }
 0x1b5   :  { %v1146_v32 = vpop.f32.mrf.mxu0  ;;  %v1189_v33 = vpop.f32.mrf.mxu1  ;;  %2110 = vmatprep.subr.bf16.mxu0 %v3204_v24  ;;  %v3247_v24 = vld [vmem:[#allocation4 + $0x3a8] ss:$16 sps:$4 sm:$0xff]   ;;  %v3255_v29 = vld [vmem:[#allocation4 + $0x36c] ss:$16 sps:$4 sm:$0xff]  }
 0x1b6   :  { %v1147_v35 = vadd.f32 %v1146_v32, %v379_v25  ;;  %v1188_v44 = vadd.f32 %v1187_v30, %v1145_v37  ;;  %v3253_v30 = vld [vmem:[#allocation4 + $0x368] ss:$16 sps:$4 sm:$0xff]  }
 0x1b7   :  { %v1148_v38 = vpop.f32.mrf.mxu0  ;;  %v1191_v39 = vpop.f32.mrf.mxu1  ;;  %v3256_v32 = vld [vmem:[#allocation4 + $0x348] ss:$16 sps:$4 sm:$0xff]  }
 0x1b8   :  { %v1149_v40 = vadd.f32 %v1148_v38, %v375_v28  ;;  %2111 = vmatpush2.bf16.msra.mxu0 %v3202_v31  ;;  %v1190_v42 = vadd.f32 %v1189_v33, %v1147_v35  ;;  %v1198_v51 = vmax.f32 %v1188_v44, 0.0  ;;  %v3250_v28 = vld [vmem:[#allocation4 + $0x388] ss:$16 sps:$4 sm:$0xff]   ;;  %v3258_v31 = vld [vmem:[#allocation4 + $0x34c] ss:$16 sps:$4 sm:$0xff]   ;;  %v3275_v38 = vld [vmem:[#allocation6 + $0x50] sm:$0xff]  }
 0x1b9   :  { %v1150_v26 = vpop.f32.mrf.mxu0  ;;  %2112 = vmatprep.subr.bf16.mxu0 %v3210_v34  ;;  %v1193_v45 = vpop.f32.mrf.mxu1  ;;  %v3261_v33 = vld [vmem:[#allocation4 + $0x32c] ss:$16 sps:$4 sm:$0xff]   ;;  %v3259_v34 = vld [vmem:[#allocation4 + $0x328] ss:$16 sps:$4 sm:$0xff]   ;;  %v3284_v44 = vld [vmem:[#allocation6 + $0xb0] sm:$0xff]  }
 0x1ba   :  { %v1192_v36 = vadd.f32 %v1191_v39, %v1149_v40  ;;  %v1151_v43 = vadd.f32 %v1150_v26, %v379_v25  ;;  %v1199_v49 = vmax.f32 %v1190_v42, 0.0  ;;  %v3252_v25 = vld [vmem:[#allocation4 + $0x38c] ss:$16 sps:$4 sm:$0xff]   ;;  %v3262_v37 = vld [vmem:[#allocation4 + $0x308] ss:$16 sps:$4 sm:$0xff]   ;;  %v3276_v39 = vld [vmem:[#allocation6 + $0x10] sm:$0xff]  }
 0x1bb   :  { %v3264_v35 = vld [vmem:[#allocation4 + $0x30c] ss:$16 sps:$4 sm:$0xff]   ;;  %v3279_v26 = vld [vmem:[#allocation6 + $0x40] sm:$0xff]  }
 0x1bc   :  { %v1194_v46 = vadd.f32 %v1193_v45, %v1151_v43  ;;  %2113 = vmatpush2.bf16.msra.mxu0 %v3208_v41  ;;  %v1202_v48 = vmax.f32 %v1192_v36, 0.0  ;;  %v3277_v40 = vld [vmem:[#allocation6 + $0x48] sm:$0xff]   ;;  %v3281_v42 = vld [vmem:[#allocation6 + $0xf8] sm:$0xff]   ;;  %v3283_v43 = vld [vmem:[#allocation6 + $0xf0] sm:$0xff]  }
 0x1bd   :  { %2114 = vmatprep.subr.bf16.mxu0 %v3216_v27  ;;  %v3278_v41 = vld [vmem:[#allocation6 + $0x8] sm:$0xff]   ;;  %v3280_v27 = vld [vmem:[#allocation6] sm:$0xff]   ;;  %v3282_v36 = vld [vmem:[#allocation6 + $0xb8] sm:$0xff]  }
 0x1be   :  { %v1203_v50 = vmax.f32 %v1194_v46, 0.0  ;;  %v3489_v54 = vpack.c.bf16 %v1202_v48, %v1198_v51  ;;  %v3285_v45 = vld [vmem:[#allocation6 + $0xe8] sm:$0xff]   ;;  %v3288_v48 = vld [vmem:[#allocation6 + $0xa0] sm:$0xff]   ;;  %v3291_v51 = vld [vmem:[#allocation6 + $0xd0] sm:$0xff]  }
 0x1bf   :  { %v3286_v46 = vld [vmem:[#allocation6 + $0xa8] sm:$0xff]  }
 0x1c0   :  { %v1207_v52 = vpack.c.bf16 %v1203_v50, %v1199_v49  ;;  %2115 = vmatpush2.bf16.msra.mxu0 %v3214_v47  ;;  %v3287_v47 = vld [vmem:[#allocation6 + $0xe0] sm:$0xff]   ;;  %v3289_v49 = vld [vmem:[#allocation6 + $0xd8] sm:$0xff]  }
 0x1c1   :  { %2825 = vmatprep.subr.bf16.mxu0 %v3265_v61  ;;  %v3290_v50 = vld [vmem:[#allocation6 + $0x98] sm:$0xff]  }
 0x1c2   :  { %2073 = vmatprep.mubr.bf16.mxu1 %v1207_v52 }
 0x1c3   :  { %2074 = vmatmul.mubr.bf16.vlgmr.msra.gmra.mxu1 %v3489_v54  ;;  %2117 = vmatmul.mubr.bf16.vlgmr.msra.gmra.mxu0 %v3482_v59  ;;  %v3269_v59 = vld [vmem:[#allocation6 + $0x68] sm:$0xff]  }
 0x1c4   :  { %2128 = vmatpush1.bf16.msra.mxu1 %v3217_v53  ;;  %2159 = vmatprep.mubr.bf16.mxu1 %v1207_v52  ;;  %v3292_v52 = vld [vmem:[#allocation6 + $0x90] sm:$0xff]   ;;  %v3293_v53 = vld [vmem:[#allocation6 + $0xc8] sm:$0xff]  }
 0x1c5   :  { %2129 = vmatprep.subr.bf16.mxu1 %v3222_v55  ;;  %2826 = vmatpush3.bf16.msra.mxu0 %v3266_v62  ;;  %v3295_v55 = vld [vmem:[#allocation6 + $0xc0] sm:$0xff]  }
 0x1c6   :  { %2827 = vmatprep.subr.bf16.mxu0 %v3267_v63 }
 0x1c8   :  { %2130 = vmatpush1.bf16.msra.mxu1 %v3220_v56  ;;  %v3296_v56 = vld [vmem:[#allocation6 + $0x80] sm:$0xff]  }
 0x1c9   :  { %2131 = vmatprep.subr.bf16.mxu1 %v3225_v57  ;;  %2828 = vmatpush3.bf16.msra.mxu0 %v3268_v2 }
 0x1ca   :  { %2829 = vmatprep.subr.bf16.mxu0 %v3269_v59 }
 0x1cc   :  { %2132 = vmatpush1.bf16.msra.mxu1 %v3223_v58 }
 0x1cd   :  { %2133 = vmatprep.subr.bf16.mxu1 %v3228_v60  ;;  %2830 = vmatpush3.bf16.msra.mxu0 %v3270_v5  ;;  %v1336_v60 = vld [vmem:[%s3516_s6] sm:$0xf] }
 0x1ce   :  { %2831 = vmatprep.subr.bf16.mxu0 %v3271_v6  ;;  %v1345_v62 = vrot.slane %v1336_v60, %v3435_v8  ;;  %v1341_v63 = vrot.slane %v1336_v60, %v3442_v13 }
 0x1d0   :  { %2134 = vmatpush1.bf16.msra.mxu1 %v3226_v0 }
 0x1d1   :  { %2135 = vmatprep.subr.bf16.mxu1 %v3231_v1  ;;  %2832 = vmatpush3.bf16.msra.mxu0 %v3272_v11 }
 0x1d2   :  { %2833 = vmatprep.subr.bf16.mxu0 %v3273_v12 }
 0x1d4   :  { %2136 = vmatpush1.bf16.msra.mxu1 %v3229_v3 }
 0x1d5   :  { %2137 = vmatprep.subr.bf16.mxu1 %v3234_v4  ;;  %2834 = vmatpush3.bf16.msra.mxu0 %v3274_v17 }
 0x1d6   :  { %2835 = vmatprep.subr.bf16.mxu0 %v3275_v38 }
 0x1d8   :  { %2138 = vmatpush1.bf16.msra.mxu1 %v3232_v7 }
 0x1d9   :  { %2139 = vmatprep.subr.bf16.mxu1 %v3237_v10  ;;  %2836 = vmatpush3.bf16.msra.mxu0 %v3276_v39 }
 0x1da   :  { %2837 = vmatprep.subr.bf16.mxu0 %v3277_v40 }
 0x1dc   :  { %2140 = vmatpush1.bf16.msra.mxu1 %v3235_v15 }
 0x1dd   :  { %2141 = vmatprep.subr.bf16.mxu1 %v3240_v16  ;;  %2838 = vmatpush3.bf16.msra.mxu0 %v3278_v41 }
 0x1de   :  { %2839 = vmatprep.subr.bf16.mxu0 %v3279_v26 }
 0x1e0   :  { %2142 = vmatpush1.bf16.msra.mxu1 %v3238_v18 }
 0x1e1   :  { %2143 = vmatprep.subr.bf16.mxu1 %v3243_v19  ;;  %2840 = vmatpush3.bf16.msra.mxu0 %v3280_v27 }
 0x1e4   :  { %2144 = vmatpush2.bf16.msra.mxu1 %v3241_v20 }
 0x1e5   :  { %2145 = vmatprep.subr.bf16.mxu1 %v3246_v21 }
 0x1e8   :  { %2146 = vmatpush2.bf16.msra.mxu1 %v3244_v22 }
 0x1e9   :  { %2147 = vmatprep.subr.bf16.mxu1 %v3249_v23  ;;  %v1353_v23 = vrot.slane %v1336_v60, %v3437_v9 }
 0x1ec   :  { %2148 = vmatpush2.bf16.msra.mxu1 %v3247_v24  ;;  %v1349_v24 = vrot.slane %v1336_v60, %v3444_v14 }
 0x1ed   :  { %2149 = vmatprep.subr.bf16.mxu1 %v3252_v25 }
 0x1f0   :  { %2150 = vmatpush2.bf16.msra.mxu1 %v3250_v28 }
 0x1f1   :  { %2151 = vmatprep.subr.bf16.mxu1 %v3255_v29 }
 0x1f4   :  { %2152 = vmatpush2.bf16.msra.mxu1 %v3253_v30 }
 0x1f5   :  { %2153 = vmatprep.subr.bf16.mxu1 %v3258_v31 }
 0x1f8   :  { %2154 = vmatpush2.bf16.msra.mxu1 %v3256_v32 }
 0x1f9   :  { %2155 = vmatprep.subr.bf16.mxu1 %v3261_v33 }
 0x1fc   :  { %2156 = vmatpush2.bf16.msra.mxu1 %v3259_v34 }
 0x1fd   :  { %2157 = vmatprep.subr.bf16.mxu1 %v3264_v35 }
 0x200   :  { %2158 = vmatpush2.bf16.msra.mxu1 %v3262_v37 }
 0x201   :  { %2847 = vmatprep.subr.bf16.mxu1 %v3281_v42 }
 0x203   :  { %2160 = vmatmul.mubr.bf16.vlgmr.msra.gmra.mxu1 %v3489_v54  ;;  %v3294_v54 = vld [vmem:[#allocation6 + $0x88] sm:$0xff]  }
 0x204   :  { %2848 = vmatpush3.bf16.msra.mxu1 %v3282_v36 }
 0x205   :  { %2849 = vmatprep.subr.bf16.mxu1 %v3283_v43 }
 0x208   :  { %2850 = vmatpush3.bf16.msra.mxu1 %v3284_v44 }
 0x209   :  { %2851 = vmatprep.subr.bf16.mxu1 %v3285_v45 }
 0x20c   :  { %2852 = vmatpush3.bf16.msra.mxu1 %v3286_v46  ;;  %v2792_v46 = vld [vmem:[%s3518_s8] ss:$0 sm:$0xff] }
 0x20d   :  { %2853 = vmatprep.subr.bf16.mxu1 %v3287_v47 }
 0x210   :  { %2854 = vmatpush3.bf16.msra.mxu1 %v3288_v48 }
 0x211   :  { %2855 = vmatprep.subr.bf16.mxu1 %v3289_v49 }
 0x214   :  { %2856 = vmatpush3.bf16.msra.mxu1 %v3290_v50 }
 0x215   :  { %2857 = vmatprep.subr.bf16.mxu1 %v3291_v51 }
 0x218   :  { %2858 = vmatpush3.bf16.msra.mxu1 %v3292_v52 }
 0x219   :  { %2859 = vmatprep.subr.bf16.mxu1 %v3293_v53 }
 0x21c   :  { %2860 = vmatpush3.bf16.msra.mxu1 %v3294_v54 }
 0x21d   :  { %2861 = vmatprep.subr.bf16.mxu1 %v3295_v55 }
 0x220   :  { %2862 = vmatpush3.bf16.msra.mxu1 %v3296_v56 }
 0x243   :  { %v2032_v57 = vpop.f32.mrf.mxu0 }
 0x244   :  { %v2033_v4 = vadd.f32 %v2032_v57, %v1341_v63 }
 0x245   :  { %v2034_v58 = vpop.f32.mrf.mxu0 }
 0x246   :  { %v2035_v59 = vadd.f32 %v2034_v58, %v1345_v62 }
 0x247   :  { %v2036_v61 = vpop.f32.mrf.mxu0 }
 0x248   :  { %v2037_v3 = vadd.f32 %v2036_v61, %v1341_v63 }
 0x249   :  { %v2038_v1 = vpop.f32.mrf.mxu0 }
 0x24a   :  { %v2039_v6 = vadd.f32 %v2038_v1, %v1345_v62 }
 0x283   :  { %v2075_v0 = vpop.f32.mrf.mxu1  ;;  %v2118_v13 = vpop.f32.mrf.mxu0 }
 0x284   :  { %v2076_v11 = vadd.f32 %v2075_v0, %v2033_v4  ;;  %v2119_v32 = vadd.f32 %v2118_v13, %v1349_v24 }
 0x285   :  { %v2077_v2 = vpop.f32.mrf.mxu1  ;;  %v2120_v21 = vpop.f32.mrf.mxu0 }
 0x286   :  { %v2078_v7 = vadd.f32 %v2077_v2, %v2035_v59  ;;  %v2170_v19 = vmax.f32 %v2076_v11, 0.0  ;;  %v2121_v30 = vadd.f32 %v2120_v21, %v1353_v23 }
 0x287   :  { %v2079_v5 = vpop.f32.mrf.mxu1  ;;  %v2122_v22 = vpop.f32.mrf.mxu0 }
 0x288   :  { %v2080_v10 = vadd.f32 %v2079_v5, %v2037_v3  ;;  %v2171_v17 = vmax.f32 %v2078_v7, 0.0  ;;  %v2123_v31 = vadd.f32 %v2122_v22, %v1349_v24 }
 0x289   :  { %v2081_v12 = vpop.f32.mrf.mxu1  ;;  %v2124_v28 = vpop.f32.mrf.mxu0 }
 0x28a   :  { %v2082_v15 = vadd.f32 %v2081_v12, %v2039_v6  ;;  %v2174_v16 = vmax.f32 %v2080_v10, 0.0  ;;  %v2125_v34 = vadd.f32 %v2124_v28, %v1353_v23 }
 0x28c   :  { %v2175_v18 = vmax.f32 %v2082_v15, 0.0  ;;  %v2178_v20 = vpack.c.bf16 %v2174_v16, %v2170_v19 }
 0x28e   :  { %v2179_v8 = vpack.c.bf16 %v2175_v18, %v2171_v17 }
 0x290   :  { %2477 = vmatprep.mubr.bf16.mxu0 %v2179_v8 }
 0x291   :  { %2478 = vmatmul.mubr.bf16.vlgmr.msra.gmra.mxu0 %v2178_v20 }
 0x2c3   :  { %v2161_v25 = vpop.f32.mrf.mxu1 }
 0x2c4   :  { %v2162_v38 = vadd.f32 %v2161_v25, %v2119_v32 }
 0x2c5   :  { %v2163_v29 = vpop.f32.mrf.mxu1 }
 0x2c6   :  { %v2164_v35 = vadd.f32 %v2163_v29, %v2121_v30  ;;  %v2172_v42 = vmax.f32 %v2162_v38, 0.0 }
 0x2c7   :  { %v2165_v33 = vpop.f32.mrf.mxu1 }
 0x2c8   :  { %v2166_v37 = vadd.f32 %v2165_v33, %v2123_v31  ;;  %v2173_v26 = vmax.f32 %v2164_v35, 0.0 }
 0x2c9   :  { %v2167_v39 = vpop.f32.mrf.mxu1 }
 0x2ca   :  { %v2168_v40 = vadd.f32 %v2167_v39, %v2125_v34  ;;  %v2176_v41 = vmax.f32 %v2166_v37, 0.0 }
 0x2cc   :  { %v2177_v27 = vmax.f32 %v2168_v40, 0.0  ;;  %v2180_v36 = vpack.c.bf16 %v2176_v41, %v2172_v42 }
 0x2ce   :  { %v2181_v9 = vpack.c.bf16 %v2177_v27, %v2173_v26 }
 0x2d0   :  { %2518 = vmatprep.mubr.bf16.mxu1 %v2181_v9 }
 0x2d1   :  { %2519 = vmatmul.mubr.bf16.vlgmr.msra.gmra.mxu1 %v2180_v36 }
 0x351   :  { %v2841_v14 = vpop.f32.mrf.mxu0 }
 0x353   :  { %v2842_v43 = vpop.f32.mrf.mxu0 }
 0x354   :  { %v2843_v45 = vadd.f32 %v2842_v43, %v2841_v14 }
 0x355   :  { %v2844_v44 = vpop.f32.mrf.mxu0 }
 0x356   :  { %v2480_v50 = vadd.f32 %v2843_v45, %v2792_v46 }
 0x357   :  { %v2845_v47 = vpop.f32.mrf.mxu0 }
 0x358   :  { %v2846_v51 = vadd.f32 %v2845_v47, %v2844_v44 }
 0x35a   :  { %v2483_v56 = vadd.f32 %v2846_v51, %v2792_v46 }
 0x391   :  { %v2863_v48 = vpop.f32.mrf.mxu1 }
 0x393   :  { %v2864_v49 = vpop.f32.mrf.mxu1 }
 0x394   :  { %v2865_v52 = vadd.f32 %v2864_v49, %v2863_v48 }
 0x395   :  { %v2866_v53 = vpop.f32.mrf.mxu1 }
 0x396   :  { %v2521_v54 = vadd.f32 %v2865_v52, %v2480_v50 }
 0x397   :  { %v2867_v55 = vpop.f32.mrf.mxu1 }
 0x398   :  { %2528 = vst.msk [vmem:[%s3519_s9] sm:$0xff] %vm2527_vm0, %v2521_v54  ;;  %v2868_v57 = vadd.f32 %v2867_v55, %v2866_v53 }
 0x39a   :  { %v2524_v58 = vadd.f32 %v2868_v57, %v2483_v56 }
 0x39c   :  { %2529 = vst.msk [vmem:[%s3519_s9 + $0x8] sm:$0xff] %vm2527_vm0, %v2524_v58 }
 0x39d   :  { %2534 = vsyncpa [#allocation3], 1 }
 0x39e   :  { %2535 = vsyncpa [#allocation5], 1 }

</bundles_post_ra>
